<compile_context>
chip_gen: v7x
topology: tpu7x:2x2x1
jax: 0.10.0
libtpu: 0.0.40
codegen_flags: <defaults>
</compile_context>

<pallas_src>
import jax
import jax.numpy as jnp
from jax import lax
from jax.experimental import pallas as pl
from jax.experimental.pallas import tpu as pltpu

EPS = 1e-5
_LANE = 128
_SUBLANE = 8


def _round_up(n, m):
    return (n + m - 1) // m * m


def _vmem_capacity_bytes():
    """Physical VMEM per core; conservative v7x-sized fallback if query fails."""
    try:
        info = pltpu.get_tpu_info()
        for name in ("vmem_capacity_bytes", "vmem_bytes", "vmem_size_bytes"):
            v = getattr(info, name, None)
            if v:
                return int(v)
    except Exception:
        pass
    return 64 << 20


def _vmem_budget(capacity):
    # v5e/v6e (128 MiB physical): use ~85% instead of stranding half behind a
    # hard 64 MiB cap.  v7x-class (64 MiB physical): leave headroom, <=56 MiB.
    if capacity >= (96 << 20):
        return int(capacity * 0.85)
    return max(min(capacity - (8 << 20), 56 << 20), 16 << 20)


def _pick_tk(d_pad, b_pad, w_bytes, act_bytes, budget):
    """Largest tk in {512,256,128} dividing d_pad whose footprint fits budget.

    Keeps the double-buffered weight stream under ~40% of the budget so the
    resident x/acc/act/out slabs are not starved (matters on 64 MiB v7x).
    """
    resident = (
        4 * b_pad * d_pad * 4        # x + out (double-buffered worst case)
        + b_pad * d_pad * 4          # f32 accumulator scratch
        + b_pad * d_pad * act_bytes  # activation scratch (compute dtype)
        + 16 * d_pad * 4             # bias/gamma/beta rows + slack
    )
    candidates = [tk for tk in (512, 256, 128) if d_pad % tk == 0] or [d_pad]
    for tk in candidates:
        w_stream = 2 * tk * d_pad * w_bytes   # double-buffered weight tiles
        need = resident + w_stream
        if need <= budget and w_stream <= int(0.4 * budget):
            return tk, need
    tk = candidates[-1]
    return tk, resident + 2 * tk * d_pad * w_bytes


# --------------------------------------------------------------------------
# Kernel
# --------------------------------------------------------------------------
def _make_kernel(nk, tk, b_actual, b_pad):
    inv_b = 1.0 / float(b_actual)
    need_row_mask = (b_pad != b_actual)

    def _batchnorm(h, g_row, be_row):
        # Training-mode BN1d: batch mean, biased variance, eps=1e-5.
        if need_row_mask:
            rmask = lax.broadcasted_iota(jnp.int32, (b_pad, 1), 0) < b_actual
            hm = jnp.where(rmask, h, 0.0)
            mean = jnp.sum(hm, axis=0, keepdims=True) * inv_b
            d = h - mean
            var = jnp.sum(jnp.where(rmask, d * d, 0.0), axis=0, keepdims=True) * inv_b
        else:
            mean = jnp.sum(h, axis=0, keepdims=True) * inv_b
            d = h - mean                      # reused for var AND normalization
            var = jnp.sum(d * d, axis=0, keepdims=True) * inv_b
        scale = g_row * lax.rsqrt(var + EPS)  # fold gamma into one (1, D) scale
        return d * scale + be_row

    def kernel(x_ref, w_ref, b1_ref, g1_ref, be1_ref, b2_ref, g2_ref, be2_ref,
               o_ref, acc_ref, act_ref):
        k = pl.program_id(0)

        def mm_step(src_ref, off, bias_ref, first):
            # One (b_pad, tk) x (tk, d_pad) MXU tile into the f32 accumulator.
            w = w_ref[...]
            lhs = src_ref[:, pl.ds(pl.multiple_of(off * tk, tk), tk)].astype(w.dtype)
            prod = jnp.dot(lhs, w, preferred_element_type=jnp.float32)
            if first:   # overwrite + bias fold (no zero-init / zero RMW)
                acc_ref[...] = prod + bias_ref[...]
            else:
                acc_ref[...] += prod

        # ---- phase 1: h1 = x @ W1^T + b1 ----
        @pl.when(k == 0)
        def _mm1_first():
            mm_step(x_ref, k, b1_ref, True)

        @pl.when(jnp.logical_and(k > 0, k < nk))
        def _mm1_rest():
            mm_step(x_ref, k, None, False)

        # ---- end of phase 1: BN1 + ReLU -> act (compute dtype) ----
        @pl.when(k == nk - 1)
        def _bn1():
            act_ref[...] = jnp.maximum(
                _batchnorm(acc_ref[...], g1_ref[...], be1_ref[...]), 0.0
            ).astype(act_ref.dtype)

        # ---- phase 2: h2 = act @ W2^T + b2 ----
        @pl.when(k == nk)
        def _mm2_first():
            mm_step(act_ref, k - nk, b2_ref, True)

        @pl.when(k > nk)
        def _mm2_rest():
            mm_step(act_ref, k - nk, None, False)

        # ---- end of phase 2: BN2 + residual + ReLU -> output ----
        @pl.when(k == 2 * nk - 1)
        def _bn2():
            y = _batchnorm(acc_ref[...], g2_ref[...], be2_ref[...])
            o_ref[...] = jnp.maximum(x_ref[...] + y, 0.0)

    return kernel


# --------------------------------------------------------------------------
# One-time parameter preparation (NOT in the per-call hot path)
# --------------------------------------------------------------------------
def prepare_params(params, dim, weights_dtype=jnp.bfloat16):
    """Transpose nn.Linear weights to (D_in, D_out), zero-pad the feature dim
    to a multiple of 128, and stack W1^T / W2^T into one (2*D_pad, D_pad) slab
    so the kernel streams a single K axis of (tk, D_pad) tiles.

    Default weights_dtype=bf16 halves weight HBM traffic (the dominant cost at
    small batch).  Pass weights_dtype=jnp.float32 for the tight-tolerance
    debug path.
    """
    d_pad = _round_up(max(dim, _LANE), _LANE)
    pad1 = (0, d_pad - dim)

    def pad_row(v):
        return jnp.pad(v.astype(jnp.float32), pad1).reshape(1, d_pad)

    def pad_wt(w):  # PyTorch (D_out, D_in) -> transposed & zero-padded (D_pad, D_pad)
        return jnp.pad(w.T.astype(jnp.float32), (pad1, pad1))

    w_cat = jnp.concatenate([pad_wt(params["w1"]), pad_wt(params["w2"])], axis=0)
    return {
        "dim": dim,
        "d_pad": d_pad,
        "w_cat": w_cat.astype(weights_dtype),      # (2*D_pad, D_pad)
        "b1": pad_row(params["b1"]), "g1": pad_row(params["g1"]), "be1": pad_row(params["be1"]),
        "b2": pad_row(params["b2"]), "g2": pad_row(params["g2"]), "be2": pad_row(params["be2"]),
    }


# --------------------------------------------------------------------------
# Hot-path wrapper
# --------------------------------------------------------------------------
def residual_block(x, prepared):
    """x: (B, D) float32. prepared: output of prepare_params()."""
    B, D = x.shape
    assert D == prepared["dim"]
    d_pad = prepared["d_pad"]
    w_cat = prepared["w_cat"]
    w_bytes = jnp.dtype(w_cat.dtype).itemsize
    act_bytes = w_bytes                      # act scratch lives in compute dtype
    b_pad = _round_up(max(B, _SUBLANE), _SUBLANE)

    budget = _vmem_budget(_vmem_capacity_bytes())
    tk, vmem_need = _pick_tk(d_pad, b_pad, w_bytes, act_bytes, budget)
    nk = d_pad // tk
    # If vmem_need still exceeds the budget after shrinking tk, request the
    # budget and let compilation report it loudly rather than clamping blindly.
    vmem_limit = min(max(int(vmem_need * 1.25) + (4 << 20), 16 << 20), budget)

    x_p = x
    if (b_pad, d_pad) != (B, D):
        x_p = jnp.pad(x, ((0, b_pad - B), (0, d_pad - D)))

    kernel = _make_kernel(nk=nk, tk=tk, b_actual=B, b_pad=b_pad)

    def run(single_buffer_constants):
        # Constant-index operands never change their block -> single buffer.
        const_kw = {"pipeline_mode": pl.Buffered(1)} if single_buffer_constants else {}
        full_spec = pl.BlockSpec((b_pad, d_pad), lambda k: (0, 0), **const_kw)
        out_spec = pl.BlockSpec((b_pad, d_pad), lambda k: (0, 0), **const_kw)
        row_spec = pl.BlockSpec((1, d_pad), lambda k: (0, 0), **const_kw)
        w_spec = pl.BlockSpec((tk, d_pad), lambda k: (k, 0))   # streamed, double-buffered

        return pl.pallas_call(
            kernel,
            out_shape=jax.ShapeDtypeStruct((b_pad, d_pad), jnp.float32),
            grid_spec=pltpu.PrefetchScalarGridSpec(
                num_scalar_prefetch=0,
                grid=(2 * nk,),
                in_specs=[
                    full_spec,                       # x (resident)
                    w_spec,                          # streamed weight tiles
                    row_spec, row_spec, row_spec,    # b1, gamma1, beta1
                    row_spec, row_spec, row_spec,    # b2, gamma2, beta2
                ],
                out_specs=out_spec,
                scratch_shapes=[
                    pltpu.VMEM((b_pad, d_pad), jnp.float32),   # matmul accumulator
                    pltpu.VMEM((b_pad, d_pad), w_cat.dtype),   # BN1+ReLU activation
                ],
            ),
            compiler_params=pltpu.CompilerParams(
                dimension_semantics=("arbitrary",),
                vmem_limit_bytes=vmem_limit,
            ),
            cost_estimate=pl.CostEstimate(
                flops=2 * 2 * b_pad * d_pad * d_pad,
                transcendentals=2 * d_pad,
                bytes_accessed=2 * d_pad * d_pad * w_bytes + 3 * 4 * b_pad * d_pad,
            ),
        )(
            x_p, w_cat,
            prepared["b1"], prepared["g1"], prepared["be1"],
            prepared["b2"], prepared["g2"], prepared["be2"],
        )

    try:
        out = run(single_buffer_constants=True)
    except Exception:
        # Fallback if this JAX build rejects pipeline_mode=pl.Buffered(1).
        out = run(single_buffer_constants=False)

    return out[:B, :D]


# --------------------------------------------------------------------------
# Pure-JAX reference (PyTorch training-mode forward) and init
# --------------------------------------------------------------------------
def residual_block_ref(x, params):
    def bn(h, g, be):
        m = jnp.mean(h, axis=0, keepdims=True)
        v = jnp.mean((h - m) ** 2, axis=0, keepdims=True)
        return (h - m) / jnp.sqrt(v + EPS) * g + be

    h = x @ params["w1"].T + params["b1"]
    h = jnp.maximum(bn(h, params["g1"], params["be1"]), 0.0)
    h = h @ params["w2"].T + params["b2"]
    h = bn(h, params["g2"], params["be2"])
    return jnp.maximum(x + h, 0.0)


def init_params(key, dim):
    k1, k2, k3, k4 = jax.random.split(key, 4)
    bound = 1.0 / jnp.sqrt(dim)
    return {
        # nn.Linear(dim, dim): weight (dim, dim), bias (dim,)
        "w1": jax.random.uniform(k1, (dim, dim), jnp.float32, -bound, bound),
        "b1": jax.random.uniform(k2, (dim,), jnp.float32, -bound, bound),
        "w2": jax.random.uniform(k3, (dim, dim), jnp.float32, -bound, bound),
        "b2": jax.random.uniform(k4, (dim,), jnp.float32, -bound, bound),
        # nn.BatchNorm1d(dim): gamma=1, beta=0 at init
        "g1": jnp.ones((dim,), jnp.float32),
        "be1": jnp.zeros((dim,), jnp.float32),
        "g2": jnp.ones((dim,), jnp.float32),
        "be2": jnp.zeros((dim,), jnp.float32),
    }


if __name__ == "__main__":
    B, D = 8, 32
    key = jax.random.PRNGKey(0)
    kx, kp = jax.random.split(key)
    x = jax.random.normal(kx, (B, D), jnp.float32)
    params = init_params(kp, D)

    ref = jax.block_until_ready(residual_block_ref(x, params))

    # Default fast path: bf16 weights + bf16 activation scratch.
    prepared_bf16 = prepare_params(params, D)           # bf16 by default
    out_bf16 = jax.block_until_ready(residual_block(x, prepared_bf16))
    assert out_bf16.shape == (B, D)
    assert jnp.allclose(out_bf16, ref, atol=5e-2, rtol=5e-2), "bf16 mismatch vs reference"

    # Debug path: f32 weights, tight tolerance vs the f32 reference.
    prepared_f32 = prepare_params(params, D, weights_dtype=jnp.float32)
    out_f32 = jax.block_until_ready(residual_block(x, prepared_f32))
    assert jnp.allclose(out_f32, ref, atol=1e-4, rtol=1e-4), "f32 mismatch vs reference"

    print("KERNEL_OK")
</pallas_src>

<mosaic_0001>
module attributes {stable_mosaic.version = 11 : i64} {
  func.func @kernel(%arg0: i32, %arg1: memref<8x128xf32, #tpu.memory_space<vmem>>, %arg2: memref<128x128xbf16, #tpu.memory_space<vmem>>, %arg3: memref<1x128xf32, #tpu.memory_space<vmem>>, %arg4: memref<1x128xf32, #tpu.memory_space<vmem>>, %arg5: memref<1x128xf32, #tpu.memory_space<vmem>>, %arg6: memref<1x128xf32, #tpu.memory_space<vmem>>, %arg7: memref<1x128xf32, #tpu.memory_space<vmem>>, %arg8: memref<1x128xf32, #tpu.memory_space<vmem>>, %arg9: memref<8x128xf32, #tpu.memory_space<vmem>>, %arg10: memref<8x128xf32, #tpu.memory_space<vmem>>, %arg11: memref<8x128xbf16, #tpu.memory_space<vmem>>) attributes {dimension_semantics = [#tpu.dimension_semantics<arbitrary>], iteration_bounds = array<i64: 2>, scalar_prefetch = 0 : i64, scratch_operands = 2 : i64, tpu.core_type = #tpu.core_type<tc>, window_params = [{pipeline_mode = #tpu.pipeline_mode<synchronous>, transform_indices = @transform_0, window_bounds = array<i64: 8, 128>}, {transform_indices = @transform_1, window_bounds = array<i64: 128, 128>}, {pipeline_mode = #tpu.pipeline_mode<synchronous>, transform_indices = @transform_2, window_bounds = array<i64: 1, 128>}, {pipeline_mode = #tpu.pipeline_mode<synchronous>, transform_indices = @transform_3, window_bounds = array<i64: 1, 128>}, {pipeline_mode = #tpu.pipeline_mode<synchronous>, transform_indices = @transform_4, window_bounds = array<i64: 1, 128>}, {pipeline_mode = #tpu.pipeline_mode<synchronous>, transform_indices = @transform_5, window_bounds = array<i64: 1, 128>}, {pipeline_mode = #tpu.pipeline_mode<synchronous>, transform_indices = @transform_6, window_bounds = array<i64: 1, 128>}, {pipeline_mode = #tpu.pipeline_mode<synchronous>, transform_indices = @transform_7, window_bounds = array<i64: 1, 128>}, {pipeline_mode = #tpu.pipeline_mode<synchronous>, transform_indices = @transform_8, window_bounds = array<i64: 8, 128>}]} {
    %c0_i32 = arith.constant 0 : i32
    %0 = arith.cmpi eq, %arg0, %c0_i32 : i32
    %1 = arith.extui %0 : i1 to i32
    %c0_i32_0 = arith.constant 0 : i32
    %2 = arith.cmpi ne, %1, %c0_i32_0 : i32
    scf.if %2 {
      %c0 = arith.constant 0 : index
      %c0_11 = arith.constant 0 : index
      %20 = vector.load %arg2[%c0, %c0_11] : memref<128x128xbf16, #tpu.memory_space<vmem>>, vector<128x128xbf16>
      %c128_i32 = arith.constant 128 : i32
      %21 = arith.muli %arg0, %c128_i32 : i32
      %22 = tpu.assume_multiple %21, 128 : i32
      %c0_12 = arith.constant 0 : index
      %23 = arith.index_cast %22 : i32 to index
      %24 = vector.load %arg1[%c0_12, %23] : memref<8x128xf32, #tpu.memory_space<vmem>>, vector<8x128xf32>
      %25 = arith.truncf %24 : vector<8x128xf32> to vector<8x128xbf16>
      %cst = arith.constant dense<0.000000e+00> : vector<8x128xf32>
      %26 = tpu.matmul %25, %20, %cst {dimension_numbers = #tpu.dot_dimension_numbers<[1], [0], [0], [1], [0, 0, 1, 1], [], []>} : vector<8x128xbf16>, vector<128x128xbf16>, vector<8x128xf32> -> vector<8x128xf32>
      %c0_13 = arith.constant 0 : index
      %c0_14 = arith.constant 0 : index
      %27 = vector.load %arg3[%c0_13, %c0_14] : memref<1x128xf32, #tpu.memory_space<vmem>>, vector<1x128xf32>
      %28 = vector.broadcast %27 : vector<1x128xf32> to vector<8x128xf32>
      %29 = arith.addf %26, %28 : vector<8x128xf32>
      %c0_15 = arith.constant 0 : index
      %c0_16 = arith.constant 0 : index
      %30 = vector.load %arg10[%c0_15, %c0_16] : memref<8x128xf32, #tpu.memory_space<vmem>>, vector<8x128xf32>
      tpu.vector_store %arg10[%c0_15, %c0_16], %29 {strides = array<i32>} : memref<8x128xf32, #tpu.memory_space<vmem>>, vector<8x128xf32>,
    } else {
    }
    %c0_i32_1 = arith.constant 0 : i32
    %3 = arith.cmpi sgt, %arg0, %c0_i32_1 : i32
    %c1_i32 = arith.constant 1 : i32
    %4 = arith.cmpi slt, %arg0, %c1_i32 : i32
    %5 = arith.andi %3, %4 : i1
    %6 = arith.extui %5 : i1 to i32
    %c0_i32_2 = arith.constant 0 : i32
    %7 = arith.cmpi ne, %6, %c0_i32_2 : i32
    scf.if %7 {
      %c0 = arith.constant 0 : index
      %c0_11 = arith.constant 0 : index
      %20 = vector.load %arg2[%c0, %c0_11] : memref<128x128xbf16, #tpu.memory_space<vmem>>, vector<128x128xbf16>
      %c128_i32 = arith.constant 128 : i32
      %21 = arith.muli %arg0, %c128_i32 : i32
      %22 = tpu.assume_multiple %21, 128 : i32
      %c0_12 = arith.constant 0 : index
      %23 = arith.index_cast %22 : i32 to index
      %24 = vector.load %arg1[%c0_12, %23] : memref<8x128xf32, #tpu.memory_space<vmem>>, vector<8x128xf32>
      %25 = arith.truncf %24 : vector<8x128xf32> to vector<8x128xbf16>
      %cst = arith.constant dense<0.000000e+00> : vector<8x128xf32>
      %26 = tpu.matmul %25, %20, %cst {dimension_numbers = #tpu.dot_dimension_numbers<[1], [0], [0], [1], [0, 0, 1, 1], [], []>} : vector<8x128xbf16>, vector<128x128xbf16>, vector<8x128xf32> -> vector<8x128xf32>
      %c0_13 = arith.constant 0 : index
      %c0_14 = arith.constant 0 : index
      %27 = vector.load %arg10[%c0_13, %c0_14] : memref<8x128xf32, #tpu.memory_space<vmem>>, vector<8x128xf32>
      %28 = arith.addf %27, %26 : vector<8x128xf32>
      %c0_15 = arith.constant 0 : index
      %c0_16 = arith.constant 0 : index
      %29 = vector.load %arg10[%c0_15, %c0_16] : memref<8x128xf32, #tpu.memory_space<vmem>>, vector<8x128xf32>
      tpu.vector_store %arg10[%c0_15, %c0_16], %28 {strides = array<i32>} : memref<8x128xf32, #tpu.memory_space<vmem>>, vector<8x128xf32>,
    } else {
    }
    %c0_i32_3 = arith.constant 0 : i32
    %8 = arith.cmpi eq, %arg0, %c0_i32_3 : i32
    %9 = arith.extui %8 : i1 to i32
    %c0_i32_4 = arith.constant 0 : i32
    %10 = arith.cmpi ne, %9, %c0_i32_4 : i32
    scf.if %10 {
      %c0 = arith.constant 0 : index
      %c0_11 = arith.constant 0 : index
      %20 = vector.load %arg10[%c0, %c0_11] : memref<8x128xf32, #tpu.memory_space<vmem>>, vector<8x128xf32>
      %c0_12 = arith.constant 0 : index
      %c0_13 = arith.constant 0 : index
      %21 = vector.load %arg4[%c0_12, %c0_13] : memref<1x128xf32, #tpu.memory_space<vmem>>, vector<1x128xf32>
      %c0_14 = arith.constant 0 : index
      %c0_15 = arith.constant 0 : index
      %22 = vector.load %arg5[%c0_14, %c0_15] : memref<1x128xf32, #tpu.memory_space<vmem>>, vector<1x128xf32>
      %cst = arith.constant dense<0.000000e+00> : vector<128xf32>
      %23 = vector.multi_reduction <add>, %20, %cst [0] : vector<8x128xf32> to vector<128xf32>
      %24 = vector.shape_cast %23 : vector<128xf32> to vector<1x128xf32>
      %cst_16 = arith.constant 1.250000e-01 : f32
      %25 = vector.broadcast %cst_16 : f32 to vector<1x128xf32>
      %26 = arith.mulf %24, %25 : vector<1x128xf32>
      %27 = vector.broadcast %26 : vector<1x128xf32> to vector<8x128xf32>
      %28 = arith.subf %20, %27 : vector<8x128xf32>
      %29 = arith.mulf %28, %28 : vector<8x128xf32>
      %cst_17 = arith.constant dense<0.000000e+00> : vector<128xf32>
      %30 = vector.multi_reduction <add>, %29, %cst_17 [0] : vector<8x128xf32> to vector<128xf32>
      %31 = vector.shape_cast %30 : vector<128xf32> to vector<1x128xf32>
      %cst_18 = arith.constant 1.250000e-01 : f32
      %32 = vector.broadcast %cst_18 : f32 to vector<1x128xf32>
      %33 = arith.mulf %31, %32 : vector<1x128xf32>
      %cst_19 = arith.constant 9.99999974E-6 : f32
      %34 = vector.broadcast %cst_19 : f32 to vector<1x128xf32>
      %35 = arith.addf %33, %34 : vector<1x128xf32>
      %36 = math.rsqrt %35 : vector<1x128xf32>
      %37 = arith.mulf %21, %36 : vector<1x128xf32>
      %38 = vector.broadcast %37 : vector<1x128xf32> to vector<8x128xf32>
      %39 = arith.mulf %28, %38 : vector<8x128xf32>
      %40 = vector.broadcast %22 : vector<1x128xf32> to vector<8x128xf32>
      %41 = arith.addf %39, %40 : vector<8x128xf32>
      %cst_20 = arith.constant 0.000000e+00 : f32
      %42 = vector.broadcast %cst_20 : f32 to vector<8x128xf32>
      %43 = arith.maximumf %41, %42 : vector<8x128xf32>
      %44 = arith.truncf %43 : vector<8x128xf32> to vector<8x128xbf16>
      %c0_21 = arith.constant 0 : index
      %c0_22 = arith.constant 0 : index
      %45 = vector.load %arg11[%c0_21, %c0_22] : memref<8x128xbf16, #tpu.memory_space<vmem>>, vector<8x128xbf16>
      tpu.vector_store %arg11[%c0_21, %c0_22], %44 {strides = array<i32>} : memref<8x128xbf16, #tpu.memory_space<vmem>>, vector<8x128xbf16>,
    } else {
    }
    %c1_i32_5 = arith.constant 1 : i32
    %11 = arith.cmpi eq, %arg0, %c1_i32_5 : i32
    %12 = arith.extui %11 : i1 to i32
    %c0_i32_6 = arith.constant 0 : i32
    %13 = arith.cmpi ne, %12, %c0_i32_6 : i32
    scf.if %13 {
      %c1_i32_11 = arith.constant 1 : i32
      %20 = arith.subi %arg0, %c1_i32_11 : i32
      %c0 = arith.constant 0 : index
      %c0_12 = arith.constant 0 : index
      %21 = vector.load %arg2[%c0, %c0_12] : memref<128x128xbf16, #tpu.memory_space<vmem>>, vector<128x128xbf16>
      %c128_i32 = arith.constant 128 : i32
      %22 = arith.muli %20, %c128_i32 : i32
      %23 = tpu.assume_multiple %22, 128 : i32
      %c0_13 = arith.constant 0 : index
      %24 = arith.index_cast %23 : i32 to index
      %25 = vector.load %arg11[%c0_13, %24] : memref<8x128xbf16, #tpu.memory_space<vmem>>, vector<8x128xbf16>
      %cst = arith.constant dense<0.000000e+00> : vector<8x128xf32>
      %26 = tpu.matmul %25, %21, %cst {dimension_numbers = #tpu.dot_dimension_numbers<[1], [0], [0], [1], [0, 0, 1, 1], [], []>} : vector<8x128xbf16>, vector<128x128xbf16>, vector<8x128xf32> -> vector<8x128xf32>
      %c0_14 = arith.constant 0 : index
      %c0_15 = arith.constant 0 : index
      %27 = vector.load %arg6[%c0_14, %c0_15] : memref<1x128xf32, #tpu.memory_space<vmem>>, vector<1x128xf32>
      %28 = vector.broadcast %27 : vector<1x128xf32> to vector<8x128xf32>
      %29 = arith.addf %26, %28 : vector<8x128xf32>
      %c0_16 = arith.constant 0 : index
      %c0_17 = arith.constant 0 : index
      %30 = vector.load %arg10[%c0_16, %c0_17] : memref<8x128xf32, #tpu.memory_space<vmem>>, vector<8x128xf32>
      tpu.vector_store %arg10[%c0_16, %c0_17], %29 {strides = array<i32>} : memref<8x128xf32, #tpu.memory_space<vmem>>, vector<8x128xf32>,
    } else {
    }
    %c1_i32_7 = arith.constant 1 : i32
    %14 = arith.cmpi sgt, %arg0, %c1_i32_7 : i32
    %15 = arith.extui %14 : i1 to i32
    %c0_i32_8 = arith.constant 0 : i32
    %16 = arith.cmpi ne, %15, %c0_i32_8 : i32
    scf.if %16 {
      %c1_i32_11 = arith.constant 1 : i32
      %20 = arith.subi %arg0, %c1_i32_11 : i32
      %c0 = arith.constant 0 : index
      %c0_12 = arith.constant 0 : index
      %21 = vector.load %arg2[%c0, %c0_12] : memref<128x128xbf16, #tpu.memory_space<vmem>>, vector<128x128xbf16>
      %c128_i32 = arith.constant 128 : i32
      %22 = arith.muli %20, %c128_i32 : i32
      %23 = tpu.assume_multiple %22, 128 : i32
      %c0_13 = arith.constant 0 : index
      %24 = arith.index_cast %23 : i32 to index
      %25 = vector.load %arg11[%c0_13, %24] : memref<8x128xbf16, #tpu.memory_space<vmem>>, vector<8x128xbf16>
      %cst = arith.constant dense<0.000000e+00> : vector<8x128xf32>
      %26 = tpu.matmul %25, %21, %cst {dimension_numbers = #tpu.dot_dimension_numbers<[1], [0], [0], [1], [0, 0, 1, 1], [], []>} : vector<8x128xbf16>, vector<128x128xbf16>, vector<8x128xf32> -> vector<8x128xf32>
      %c0_14 = arith.constant 0 : index
      %c0_15 = arith.constant 0 : index
      %27 = vector.load %arg10[%c0_14, %c0_15] : memref<8x128xf32, #tpu.memory_space<vmem>>, vector<8x128xf32>
      %28 = arith.addf %27, %26 : vector<8x128xf32>
      %c0_16 = arith.constant 0 : index
      %c0_17 = arith.constant 0 : index
      %29 = vector.load %arg10[%c0_16, %c0_17] : memref<8x128xf32, #tpu.memory_space<vmem>>, vector<8x128xf32>
      tpu.vector_store %arg10[%c0_16, %c0_17], %28 {strides = array<i32>} : memref<8x128xf32, #tpu.memory_space<vmem>>, vector<8x128xf32>,
    } else {
    }
    %c1_i32_9 = arith.constant 1 : i32
    %17 = arith.cmpi eq, %arg0, %c1_i32_9 : i32
    %18 = arith.extui %17 : i1 to i32
    %c0_i32_10 = arith.constant 0 : i32
    %19 = arith.cmpi ne, %18, %c0_i32_10 : i32
    scf.if %19 {
      %c0 = arith.constant 0 : index
      %c0_11 = arith.constant 0 : index
      %20 = vector.load %arg10[%c0, %c0_11] : memref<8x128xf32, #tpu.memory_space<vmem>>, vector<8x128xf32>
      %c0_12 = arith.constant 0 : index
      %c0_13 = arith.constant 0 : index
      %21 = vector.load %arg7[%c0_12, %c0_13] : memref<1x128xf32, #tpu.memory_space<vmem>>, vector<1x128xf32>
      %c0_14 = arith.constant 0 : index
      %c0_15 = arith.constant 0 : index
      %22 = vector.load %arg8[%c0_14, %c0_15] : memref<1x128xf32, #tpu.memory_space<vmem>>, vector<1x128xf32>
      %cst = arith.constant dense<0.000000e+00> : vector<128xf32>
      %23 = vector.multi_reduction <add>, %20, %cst [0] : vector<8x128xf32> to vector<128xf32>
      %24 = vector.shape_cast %23 : vector<128xf32> to vector<1x128xf32>
      %cst_16 = arith.constant 1.250000e-01 : f32
      %25 = vector.broadcast %cst_16 : f32 to vector<1x128xf32>
      %26 = arith.mulf %24, %25 : vector<1x128xf32>
      %27 = vector.broadcast %26 : vector<1x128xf32> to vector<8x128xf32>
      %28 = arith.subf %20, %27 : vector<8x128xf32>
      %29 = arith.mulf %28, %28 : vector<8x128xf32>
      %cst_17 = arith.constant dense<0.000000e+00> : vector<128xf32>
      %30 = vector.multi_reduction <add>, %29, %cst_17 [0] : vector<8x128xf32> to vector<128xf32>
      %31 = vector.shape_cast %30 : vector<128xf32> to vector<1x128xf32>
      %cst_18 = arith.constant 1.250000e-01 : f32
      %32 = vector.broadcast %cst_18 : f32 to vector<1x128xf32>
      %33 = arith.mulf %31, %32 : vector<1x128xf32>
      %cst_19 = arith.constant 9.99999974E-6 : f32
      %34 = vector.broadcast %cst_19 : f32 to vector<1x128xf32>
      %35 = arith.addf %33, %34 : vector<1x128xf32>
      %36 = math.rsqrt %35 : vector<1x128xf32>
      %37 = arith.mulf %21, %36 : vector<1x128xf32>
      %38 = vector.broadcast %37 : vector<1x128xf32> to vector<8x128xf32>
      %39 = arith.mulf %28, %38 : vector<8x128xf32>
      %40 = vector.broadcast %22 : vector<1x128xf32> to vector<8x128xf32>
      %41 = arith.addf %39, %40 : vector<8x128xf32>
      %c0_20 = arith.constant 0 : index
      %c0_21 = arith.constant 0 : index
      %42 = vector.load %arg1[%c0_20, %c0_21] : memref<8x128xf32, #tpu.memory_space<vmem>>, vector<8x128xf32>
      %43 = arith.addf %42, %41 : vector<8x128xf32>
      %cst_22 = arith.constant 0.000000e+00 : f32
      %44 = vector.broadcast %cst_22 : f32 to vector<8x128xf32>
      %45 = arith.maximumf %43, %44 : vector<8x128xf32>
      %c0_23 = arith.constant 0 : index
      %c0_24 = arith.constant 0 : index
      %46 = vector.load %arg9[%c0_23, %c0_24] : memref<8x128xf32, #tpu.memory_space<vmem>>, vector<8x128xf32>
      tpu.vector_store %arg9[%c0_23, %c0_24], %45 {strides = array<i32>} : memref<8x128xf32, #tpu.memory_space<vmem>>, vector<8x128xf32>,
    } else {
    }
    return
  }
  func.func @transform_0(%arg0: i32) -> (i32, i32) {
    %c0_i32 = arith.constant 0 : i32
    %c0_i32_0 = arith.constant 0 : i32
    %c0_i32_1 = arith.constant 0 : i32
    return %c0_i32, %c0_i32_0 : i32, i32
  }
  func.func @transform_1(%arg0: i32) -> (i32, i32) {
    %c0_i32 = arith.constant 0 : i32
    %c0_i32_0 = arith.constant 0 : i32
    return %arg0, %c0_i32 : i32, i32
  }
  func.func @transform_2(%arg0: i32) -> (i32, i32) {
    %c0_i32 = arith.constant 0 : i32
    %c0_i32_0 = arith.constant 0 : i32
    %c0_i32_1 = arith.constant 0 : i32
    return %c0_i32, %c0_i32_0 : i32, i32
  }
  func.func @transform_3(%arg0: i32) -> (i32, i32) {
    %c0_i32 = arith.constant 0 : i32
    %c0_i32_0 = arith.constant 0 : i32
    %c0_i32_1 = arith.constant 0 : i32
    return %c0_i32, %c0_i32_0 : i32, i32
  }
  func.func @transform_4(%arg0: i32) -> (i32, i32) {
    %c0_i32 = arith.constant 0 : i32
    %c0_i32_0 = arith.constant 0 : i32
    %c0_i32_1 = arith.constant 0 : i32
    return %c0_i32, %c0_i32_0 : i32, i32
  }
  func.func @transform_5(%arg0: i32) -> (i32, i32) {
    %c0_i32 = arith.constant 0 : i32
    %c0_i32_0 = arith.constant 0 : i32
    %c0_i32_1 = arith.constant 0 : i32
    return %c0_i32, %c0_i32_0 : i32, i32
  }
  func.func @transform_6(%arg0: i32) -> (i32, i32) {
    %c0_i32 = arith.constant 0 : i32
    %c0_i32_0 = arith.constant 0 : i32
    %c0_i32_1 = arith.constant 0 : i32
    return %c0_i32, %c0_i32_0 : i32, i32
  }
  func.func @transform_7(%arg0: i32) -> (i32, i32) {
    %c0_i32 = arith.constant 0 : i32
    %c0_i32_0 = arith.constant 0 : i32
    %c0_i32_1 = arith.constant 0 : i32
    return %c0_i32, %c0_i32_0 : i32, i32
  }
  func.func @transform_8(%arg0: i32) -> (i32, i32) {
    %c0_i32 = arith.constant 0 : i32
    %c0_i32_0 = arith.constant 0 : i32
    %c0_i32_1 = arith.constant 0 : i32
    return %c0_i32, %c0_i32_0 : i32, i32
  }
}

module attributes {stable_mosaic.version = 11 : i64} {
  func.func @kernel(%arg0: i32, %arg1: memref<8x128xf32, #tpu.memory_space<vmem>>, %arg2: memref<128x128xbf16, #tpu.memory_space<vmem>>, %arg3: memref<1x128xf32, #tpu.memory_space<vmem>>, %arg4: memref<1x128xf32, #tpu.memory_space<vmem>>, %arg5: memref<1x128xf32, #tpu.memory_space<vmem>>, %arg6: memref<1x128xf32, #tpu.memory_space<vmem>>, %arg7: memref<1x128xf32, #tpu.memory_space<vmem>>, %arg8: memref<1x128xf32, #tpu.memory_space<vmem>>, %arg9: memref<8x128xf32, #tpu.memory_space<vmem>>, %arg10: memref<8x128xf32, #tpu.memory_space<vmem>>, %arg11: memref<8x128xbf16, #tpu.memory_space<vmem>>) attributes {dimension_semantics = [#tpu.dimension_semantics<arbitrary>], iteration_bounds = array<i64: 2>, scalar_prefetch = 0 : i64, scratch_operands = 2 : i64, tpu.core_type = #tpu.core_type<tc>, window_params = [{pipeline_mode = #tpu.pipeline_mode<synchronous>, transform_indices = @transform_0, window_bounds = array<i64: 8, 128>}, {transform_indices = @transform_1, window_bounds = array<i64: 128, 128>}, {pipeline_mode = #tpu.pipeline_mode<synchronous>, transform_indices = @transform_2, window_bounds = array<i64: 1, 128>}, {pipeline_mode = #tpu.pipeline_mode<synchronous>, transform_indices = @transform_3, window_bounds = array<i64: 1, 128>}, {pipeline_mode = #tpu.pipeline_mode<synchronous>, transform_indices = @transform_4, window_bounds = array<i64: 1, 128>}, {pipeline_mode = #tpu.pipeline_mode<synchronous>, transform_indices = @transform_5, window_bounds = array<i64: 1, 128>}, {pipeline_mode = #tpu.pipeline_mode<synchronous>, transform_indices = @transform_6, window_bounds = array<i64: 1, 128>}, {pipeline_mode = #tpu.pipeline_mode<synchronous>, transform_indices = @transform_7, window_bounds = array<i64: 1, 128>}, {pipeline_mode = #tpu.pipeline_mode<synchronous>, transform_indices = @transform_8, window_bounds = array<i64: 8, 128>}]} {
    %c0_i32 = arith.constant 0 : i32
    %0 = arith.cmpi eq, %arg0, %c0_i32 : i32
    %1 = arith.extui %0 : i1 to i32
    %c0_i32_0 = arith.constant 0 : i32
    %2 = arith.cmpi ne, %1, %c0_i32_0 : i32
    scf.if %2 {
      %c0 = arith.constant 0 : index
      %c0_11 = arith.constant 0 : index
      %20 = vector.load %arg2[%c0, %c0_11] : memref<128x128xbf16, #tpu.memory_space<vmem>>, vector<128x128xbf16>
      %c128_i32 = arith.constant 128 : i32
      %21 = arith.muli %arg0, %c128_i32 : i32
      %22 = tpu.assume_multiple %21, 128 : i32
      %c0_12 = arith.constant 0 : index
      %23 = arith.index_cast %22 : i32 to index
      %24 = vector.load %arg1[%c0_12, %23] : memref<8x128xf32, #tpu.memory_space<vmem>>, vector<8x128xf32>
      %25 = arith.truncf %24 : vector<8x128xf32> to vector<8x128xbf16>
      %cst = arith.constant dense<0.000000e+00> : vector<8x128xf32>
      %26 = tpu.matmul %25, %20, %cst {dimension_numbers = #tpu.dot_dimension_numbers<[1], [0], [0], [1], [0, 0, 1, 1], [], []>} : vector<8x128xbf16>, vector<128x128xbf16>, vector<8x128xf32> -> vector<8x128xf32>
      %c0_13 = arith.constant 0 : index
      %c0_14 = arith.constant 0 : index
      %27 = vector.load %arg3[%c0_13, %c0_14] : memref<1x128xf32, #tpu.memory_space<vmem>>, vector<1x128xf32>
      %28 = vector.broadcast %27 : vector<1x128xf32> to vector<8x128xf32>
      %29 = arith.addf %26, %28 : vector<8x128xf32>
      %c0_15 = arith.constant 0 : index
      %c0_16 = arith.constant 0 : index
      %30 = vector.load %arg10[%c0_15, %c0_16] : memref<8x128xf32, #tpu.memory_space<vmem>>, vector<8x128xf32>
      tpu.vector_store %arg10[%c0_15, %c0_16], %29 {strides = array<i32>} : memref<8x128xf32, #tpu.memory_space<vmem>>, vector<8x128xf32>,
    } else {
    }
    %c0_i32_1 = arith.constant 0 : i32
    %3 = arith.cmpi sgt, %arg0, %c0_i32_1 : i32
    %c1_i32 = arith.constant 1 : i32
    %4 = arith.cmpi slt, %arg0, %c1_i32 : i32
    %5 = arith.andi %3, %4 : i1
    %6 = arith.extui %5 : i1 to i32
    %c0_i32_2 = arith.constant 0 : i32
    %7 = arith.cmpi ne, %6, %c0_i32_2 : i32
    scf.if %7 {
      %c0 = arith.constant 0 : index
      %c0_11 = arith.constant 0 : index
      %20 = vector.load %arg2[%c0, %c0_11] : memref<128x128xbf16, #tpu.memory_space<vmem>>, vector<128x128xbf16>
      %c128_i32 = arith.constant 128 : i32
      %21 = arith.muli %arg0, %c128_i32 : i32
      %22 = tpu.assume_multiple %21, 128 : i32
      %c0_12 = arith.constant 0 : index
      %23 = arith.index_cast %22 : i32 to index
      %24 = vector.load %arg1[%c0_12, %23] : memref<8x128xf32, #tpu.memory_space<vmem>>, vector<8x128xf32>
      %25 = arith.truncf %24 : vector<8x128xf32> to vector<8x128xbf16>
      %cst = arith.constant dense<0.000000e+00> : vector<8x128xf32>
      %26 = tpu.matmul %25, %20, %cst {dimension_numbers = #tpu.dot_dimension_numbers<[1], [0], [0], [1], [0, 0, 1, 1], [], []>} : vector<8x128xbf16>, vector<128x128xbf16>, vector<8x128xf32> -> vector<8x128xf32>
      %c0_13 = arith.constant 0 : index
      %c0_14 = arith.constant 0 : index
      %27 = vector.load %arg10[%c0_13, %c0_14] : memref<8x128xf32, #tpu.memory_space<vmem>>, vector<8x128xf32>
      %28 = arith.addf %27, %26 : vector<8x128xf32>
      %c0_15 = arith.constant 0 : index
      %c0_16 = arith.constant 0 : index
      %29 = vector.load %arg10[%c0_15, %c0_16] : memref<8x128xf32, #tpu.memory_space<vmem>>, vector<8x128xf32>
      tpu.vector_store %arg10[%c0_15, %c0_16], %28 {strides = array<i32>} : memref<8x128xf32, #tpu.memory_space<vmem>>, vector<8x128xf32>,
    } else {
    }
    %c0_i32_3 = arith.constant 0 : i32
    %8 = arith.cmpi eq, %arg0, %c0_i32_3 : i32
    %9 = arith.extui %8 : i1 to i32
    %c0_i32_4 = arith.constant 0 : i32
    %10 = arith.cmpi ne, %9, %c0_i32_4 : i32
    scf.if %10 {
      %c0 = arith.constant 0 : index
      %c0_11 = arith.constant 0 : index
      %20 = vector.load %arg10[%c0, %c0_11] : memref<8x128xf32, #tpu.memory_space<vmem>>, vector<8x128xf32>
      %c0_12 = arith.constant 0 : index
      %c0_13 = arith.constant 0 : index
      %21 = vector.load %arg4[%c0_12, %c0_13] : memref<1x128xf32, #tpu.memory_space<vmem>>, vector<1x128xf32>
      %c0_14 = arith.constant 0 : index
      %c0_15 = arith.constant 0 : index
      %22 = vector.load %arg5[%c0_14, %c0_15] : memref<1x128xf32, #tpu.memory_space<vmem>>, vector<1x128xf32>
      %cst = arith.constant dense<0.000000e+00> : vector<128xf32>
      %23 = vector.multi_reduction <add>, %20, %cst [0] : vector<8x128xf32> to vector<128xf32>
      %24 = vector.shape_cast %23 : vector<128xf32> to vector<1x128xf32>
      %cst_16 = arith.constant 1.250000e-01 : f32
      %25 = vector.broadcast %cst_16 : f32 to vector<1x128xf32>
      %26 = arith.mulf %24, %25 : vector<1x128xf32>
      %27 = vector.broadcast %26 : vector<1x128xf32> to vector<8x128xf32>
      %28 = arith.subf %20, %27 : vector<8x128xf32>
      %29 = arith.mulf %28, %28 : vector<8x128xf32>
      %cst_17 = arith.constant dense<0.000000e+00> : vector<128xf32>
      %30 = vector.multi_reduction <add>, %29, %cst_17 [0] : vector<8x128xf32> to vector<128xf32>
      %31 = vector.shape_cast %30 : vector<128xf32> to vector<1x128xf32>
      %cst_18 = arith.constant 1.250000e-01 : f32
      %32 = vector.broadcast %cst_18 : f32 to vector<1x128xf32>
      %33 = arith.mulf %31, %32 : vector<1x128xf32>
      %cst_19 = arith.constant 9.99999974E-6 : f32
      %34 = vector.broadcast %cst_19 : f32 to vector<1x128xf32>
      %35 = arith.addf %33, %34 : vector<1x128xf32>
      %36 = math.rsqrt %35 : vector<1x128xf32>
      %37 = arith.mulf %21, %36 : vector<1x128xf32>
      %38 = vector.broadcast %37 : vector<1x128xf32> to vector<8x128xf32>
      %39 = arith.mulf %28, %38 : vector<8x128xf32>
      %40 = vector.broadcast %22 : vector<1x128xf32> to vector<8x128xf32>
      %41 = arith.addf %39, %40 : vector<8x128xf32>
      %cst_20 = arith.constant 0.000000e+00 : f32
      %42 = vector.broadcast %cst_20 : f32 to vector<8x128xf32>
      %43 = arith.maximumf %41, %42 : vector<8x128xf32>
      %44 = arith.truncf %43 : vector<8x128xf32> to vector<8x128xbf16>
      %c0_21 = arith.constant 0 : index
      %c0_22 = arith.constant 0 : index
      %45 = vector.load %arg11[%c0_21, %c0_22] : memref<8x128xbf16, #tpu.memory_space<vmem>>, vector<8x128xbf16>
      tpu.vector_store %arg11[%c0_21, %c0_22], %44 {strides = array<i32>} : memref<8x128xbf16, #tpu.memory_space<vmem>>, vector<8x128xbf16>,
    } else {
    }
    %c1_i32_5 = arith.constant 1 : i32
    %11 = arith.cmpi eq, %arg0, %c1_i32_5 : i32
    %12 = arith.extui %11 : i1 to i32
    %c0_i32_6 = arith.constant 0 : i32
    %13 = arith.cmpi ne, %12, %c0_i32_6 : i32
    scf.if %13 {
      %c1_i32_11 = arith.constant 1 : i32
      %20 = arith.subi %arg0, %c1_i32_11 : i32
      %c0 = arith.constant 0 : index
      %c0_12 = arith.constant 0 : index
      %21 = vector.load %arg2[%c0, %c0_12] : memref<128x128xbf16, #tpu.memory_space<vmem>>, vector<128x128xbf16>
      %c128_i32 = arith.constant 128 : i32
      %22 = arith.muli %20, %c128_i32 : i32
      %23 = tpu.assume_multiple %22, 128 : i32
      %c0_13 = arith.constant 0 : index
      %24 = arith.index_cast %23 : i32 to index
      %25 = vector.load %arg11[%c0_13, %24] : memref<8x128xbf16, #tpu.memory_space<vmem>>, vector<8x128xbf16>
      %cst = arith.constant dense<0.000000e+00> : vector<8x128xf32>
      %26 = tpu.matmul %25, %21, %cst {dimension_numbers = #tpu.dot_dimension_numbers<[1], [0], [0], [1], [0, 0, 1, 1], [], []>} : vector<8x128xbf16>, vector<128x128xbf16>, vector<8x128xf32> -> vector<8x128xf32>
      %c0_14 = arith.constant 0 : index
      %c0_15 = arith.constant 0 : index
      %27 = vector.load %arg6[%c0_14, %c0_15] : memref<1x128xf32, #tpu.memory_space<vmem>>, vector<1x128xf32>
      %28 = vector.broadcast %27 : vector<1x128xf32> to vector<8x128xf32>
      %29 = arith.addf %26, %28 : vector<8x128xf32>
      %c0_16 = arith.constant 0 : index
      %c0_17 = arith.constant 0 : index
      %30 = vector.load %arg10[%c0_16, %c0_17] : memref<8x128xf32, #tpu.memory_space<vmem>>, vector<8x128xf32>
      tpu.vector_store %arg10[%c0_16, %c0_17], %29 {strides = array<i32>} : memref<8x128xf32, #tpu.memory_space<vmem>>, vector<8x128xf32>,
    } else {
    }
    %c1_i32_7 = arith.constant 1 : i32
    %14 = arith.cmpi sgt, %arg0, %c1_i32_7 : i32
    %15 = arith.extui %14 : i1 to i32
    %c0_i32_8 = arith.constant 0 : i32
    %16 = arith.cmpi ne, %15, %c0_i32_8 : i32
    scf.if %16 {
      %c1_i32_11 = arith.constant 1 : i32
      %20 = arith.subi %arg0, %c1_i32_11 : i32
      %c0 = arith.constant 0 : index
      %c0_12 = arith.constant 0 : index
      %21 = vector.load %arg2[%c0, %c0_12] : memref<128x128xbf16, #tpu.memory_space<vmem>>, vector<128x128xbf16>
      %c128_i32 = arith.constant 128 : i32
      %22 = arith.muli %20, %c128_i32 : i32
      %23 = tpu.assume_multiple %22, 128 : i32
      %c0_13 = arith.constant 0 : index
      %24 = arith.index_cast %23 : i32 to index
      %25 = vector.load %arg11[%c0_13, %24] : memref<8x128xbf16, #tpu.memory_space<vmem>>, vector<8x128xbf16>
      %cst = arith.constant dense<0.000000e+00> : vector<8x128xf32>
      %26 = tpu.matmul %25, %21, %cst {dimension_numbers = #tpu.dot_dimension_numbers<[1], [0], [0], [1], [0, 0, 1, 1], [], []>} : vector<8x128xbf16>, vector<128x128xbf16>, vector<8x128xf32> -> vector<8x128xf32>
      %c0_14 = arith.constant 0 : index
      %c0_15 = arith.constant 0 : index
      %27 = vector.load %arg10[%c0_14, %c0_15] : memref<8x128xf32, #tpu.memory_space<vmem>>, vector<8x128xf32>
      %28 = arith.addf %27, %26 : vector<8x128xf32>
      %c0_16 = arith.constant 0 : index
      %c0_17 = arith.constant 0 : index
      %29 = vector.load %arg10[%c0_16, %c0_17] : memref<8x128xf32, #tpu.memory_space<vmem>>, vector<8x128xf32>
      tpu.vector_store %arg10[%c0_16, %c0_17], %28 {strides = array<i32>} : memref<8x128xf32, #tpu.memory_space<vmem>>, vector<8x128xf32>,
    } else {
    }
    %c1_i32_9 = arith.constant 1 : i32
    %17 = arith.cmpi eq, %arg0, %c1_i32_9 : i32
    %18 = arith.extui %17 : i1 to i32
    %c0_i32_10 = arith.constant 0 : i32
    %19 = arith.cmpi ne, %18, %c0_i32_10 : i32
    scf.if %19 {
      %c0 = arith.constant 0 : index
      %c0_11 = arith.constant 0 : index
      %20 = vector.load %arg10[%c0, %c0_11] : memref<8x128xf32, #tpu.memory_space<vmem>>, vector<8x128xf32>
      %c0_12 = arith.constant 0 : index
      %c0_13 = arith.constant 0 : index
      %21 = vector.load %arg7[%c0_12, %c0_13] : memref<1x128xf32, #tpu.memory_space<vmem>>, vector<1x128xf32>
      %c0_14 = arith.constant 0 : index
      %c0_15 = arith.constant 0 : index
      %22 = vector.load %arg8[%c0_14, %c0_15] : memref<1x128xf32, #tpu.memory_space<vmem>>, vector<1x128xf32>
      %cst = arith.constant dense<0.000000e+00> : vector<128xf32>
      %23 = vector.multi_reduction <add>, %20, %cst [0] : vector<8x128xf32> to vector<128xf32>
      %24 = vector.shape_cast %23 : vector<128xf32> to vector<1x128xf32>
      %cst_16 = arith.constant 1.250000e-01 : f32
      %25 = vector.broadcast %cst_16 : f32 to vector<1x128xf32>
      %26 = arith.mulf %24, %25 : vector<1x128xf32>
      %27 = vector.broadcast %26 : vector<1x128xf32> to vector<8x128xf32>
      %28 = arith.subf %20, %27 : vector<8x128xf32>
      %29 = arith.mulf %28, %28 : vector<8x128xf32>
      %cst_17 = arith.constant dense<0.000000e+00> : vector<128xf32>
      %30 = vector.multi_reduction <add>, %29, %cst_17 [0] : vector<8x128xf32> to vector<128xf32>
      %31 = vector.shape_cast %30 : vector<128xf32> to vector<1x128xf32>
      %cst_18 = arith.constant 1.250000e-01 : f32
      %32 = vector.broadcast %cst_18 : f32 to vector<1x128xf32>
      %33 = arith.mulf %31, %32 : vector<1x128xf32>
      %cst_19 = arith.constant 9.99999974E-6 : f32
      %34 = vector.broadcast %cst_19 : f32 to vector<1x128xf32>
      %35 = arith.addf %33, %34 : vector<1x128xf32>
      %36 = math.rsqrt %35 : vector<1x128xf32>
      %37 = arith.mulf %21, %36 : vector<1x128xf32>
      %38 = vector.broadcast %37 : vector<1x128xf32> to vector<8x128xf32>
      %39 = arith.mulf %28, %38 : vector<8x128xf32>
      %40 = vector.broadcast %22 : vector<1x128xf32> to vector<8x128xf32>
      %41 = arith.addf %39, %40 : vector<8x128xf32>
      %c0_20 = arith.constant 0 : index
      %c0_21 = arith.constant 0 : index
      %42 = vector.load %arg1[%c0_20, %c0_21] : memref<8x128xf32, #tpu.memory_space<vmem>>, vector<8x128xf32>
      %43 = arith.addf %42, %41 : vector<8x128xf32>
      %cst_22 = arith.constant 0.000000e+00 : f32
      %44 = vector.broadcast %cst_22 : f32 to vector<8x128xf32>
      %45 = arith.maximumf %43, %44 : vector<8x128xf32>
      %c0_23 = arith.constant 0 : index
      %c0_24 = arith.constant 0 : index
      %46 = vector.load %arg9[%c0_23, %c0_24] : memref<8x128xf32, #tpu.memory_space<vmem>>, vector<8x128xf32>
      tpu.vector_store %arg9[%c0_23, %c0_24], %45 {strides = array<i32>} : memref<8x128xf32, #tpu.memory_space<vmem>>, vector<8x128xf32>,
    } else {
    }
    return
  }
  func.func @transform_0(%arg0: i32) -> (i32, i32) {
    %c0_i32 = arith.constant 0 : i32
    %c0_i32_0 = arith.constant 0 : i32
    %c0_i32_1 = arith.constant 0 : i32
    return %c0_i32, %c0_i32_0 : i32, i32
  }
  func.func @transform_1(%arg0: i32) -> (i32, i32) {
    %c0_i32 = arith.constant 0 : i32
    %c0_i32_0 = arith.constant 0 : i32
    return %arg0, %c0_i32 : i32, i32
  }
  func.func @transform_2(%arg0: i32) -> (i32, i32) {
    %c0_i32 = arith.constant 0 : i32
    %c0_i32_0 = arith.constant 0 : i32
    %c0_i32_1 = arith.constant 0 : i32
    return %c0_i32, %c0_i32_0 : i32, i32
  }
  func.func @transform_3(%arg0: i32) -> (i32, i32) {
    %c0_i32 = arith.constant 0 : i32
    %c0_i32_0 = arith.constant 0 : i32
    %c0_i32_1 = arith.constant 0 : i32
    return %c0_i32, %c0_i32_0 : i32, i32
  }
  func.func @transform_4(%arg0: i32) -> (i32, i32) {
    %c0_i32 = arith.constant 0 : i32
    %c0_i32_0 = arith.constant 0 : i32
    %c0_i32_1 = arith.constant 0 : i32
    return %c0_i32, %c0_i32_0 : i32, i32
  }
  func.func @transform_5(%arg0: i32) -> (i32, i32) {
    %c0_i32 = arith.constant 0 : i32
    %c0_i32_0 = arith.constant 0 : i32
    %c0_i32_1 = arith.constant 0 : i32
    return %c0_i32, %c0_i32_0 : i32, i32
  }
  func.func @transform_6(%arg0: i32) -> (i32, i32) {
    %c0_i32 = arith.constant 0 : i32
    %c0_i32_0 = arith.constant 0 : i32
    %c0_i32_1 = arith.constant 0 : i32
    return %c0_i32, %c0_i32_0 : i32, i32
  }
  func.func @transform_7(%arg0: i32) -> (i32, i32) {
    %c0_i32 = arith.constant 0 : i32
    %c0_i32_0 = arith.constant 0 : i32
    %c0_i32_1 = arith.constant 0 : i32
    return %c0_i32, %c0_i32_0 : i32, i32
  }
  func.func @transform_8(%arg0: i32) -> (i32, i32) {
    %c0_i32 = arith.constant 0 : i32
    %c0_i32_0 = arith.constant 0 : i32
    %c0_i32_1 = arith.constant 0 : i32
    return %c0_i32, %c0_i32_0 : i32, i32
  }
}

</mosaic_0001>

<bundles_post_ra>
// kernel: tpu_custom_call.1
= control target key start
LH: loop header
LB: loop body
LE: loop exit
PB: predicated region body
PF: predicated region fallthrough
CT: control target
= control target key end

     0   :  { %13 = vsyncpa [#allocation5], 0  ;;  %s1673_s0 = inlined_call_operand.hbm [shape: f32[8,128], index: 0, kind: input, shape index: {}]   ;;  %s1674_s1 = inlined_call_operand.hbm [shape: bf16[256,128], index: 1, kind: input, shape index: {}]   ;;  %s1675_s2 = inlined_call_operand.vmem [shape: f32[1,128], index: 2, kind: input, shape index: {}]   ;;  %s1676_s3 = inlined_call_operand.vmem [shape: f32[1,128], index: 3, kind: input, shape index: {}]   ;;  %s1677_s4 = inlined_call_operand.vmem [shape: f32[1,128], index: 4, kind: input, shape index: {}]   ;;  %s1678_s5 = inlined_call_operand.vmem [shape: f32[1,128], index: 5, kind: input, shape index: {}]   ;;  %s1679_s6 = inlined_call_operand.vmem [shape: f32[1,128], index: 6, kind: input, shape index: {}]   ;;  %s1680_s7 = inlined_call_operand.vmem [shape: f32[1,128], index: 7, kind: input, shape index: {}]   ;;  %s1681_s8 = inlined_call_operand.hbm [shape: f32[8,128], index: 8, kind: output, shape index: {}]  }
   0x1   :  { %14 = vsyncpa [#allocation8], 0 }
   0x2   :  { %16 = vsyncpa [#allocation8 + $0x1], 0 }
   0x3   :  { %17 = vsyncpa [#allocation6], 0  ;;  %s1438_s27 = smov 0   ;;  %s1440_s28 = smov 0  }
   0x4   :  { %s1442_s29 = smov 0   ;;  %s1444_s30 = smov 0  }
   0x5 LB: > { %s1457_s9 = sadd.s32 4294967295, %s1378_s30   ;;  %s1460_s10 = sadd.s32 1, %s1378_s30   ;;  %s1378_s30 = sphi %s1444_s30, %s1701_s30   ;;  %s1374_s29 = sphi %s1442_s29, %s1700_s29   ;;  %s1370_s28 = sphi %s1440_s28, %s1699_s28   ;;  %s1366_s27 = sphi %s1438_s27, %s1698_s27  }
   0x6   : > { %s48_s11 = ssub.s32 %s1378_s30, %s1460_s10  ;;  %s51_s12 = sadd.s32 1, %s1374_s29 }
   0x7   : > { %p49_p0 = scmp.eq.s32.totalorder %s48_s11, 0  ;;  %p58_p1 = scmp.ne.s32.totalorder %s1374_s29, %s1370_s28 }
   0x8   : > { %p59_p2 = scmp.eq.s32.totalorder %s1378_s30, 0  ;;  %p64_p3 = scmp.ne.s32.totalorder %s1370_s28, %s1366_s27 }
   0x9   : > { %s1470_s13 = scalar_select %p49_p0, %s1374_s29, %s51_s12  }
   0xa   : > { %p1472_p4 = por %p59_p2, %p58_p1  ;;  %p1682_p5 = scmp.eq.s32.totalorder %s1457_s9, 0 }
   0xb   : > { %p970_p6 = scmp.ge.s32.totalorder %s1378_s30, 1  ;;  %p222_p7 = scmp.lt.s32.totalorder %s1378_s30, 3 }
   0xc   : > { %p1481_p8 = por %p1682_p5, %p64_p3  ;;  %s1380_s17 = smov [#allocation4]  }
   0xd   : > { %p1486_p10 = pnand %p970_p6, %p222_p7  ;;  %s235_s18 = sshll.u32 %s1380_s17, 4  ;;  %s236_s18 = int_to_ptr.vmem [resolvable:$true] %s235_s18 }
   0xe   : > { %s1687_s15 = scalar_select %p1481_p8, 1, 0 }
   0xf   : > { %s1688_s16 = scalar_select %p1486_p10, 1, 0 }
  0x10   : > { %p1159_p11 = pneg %p1486_p10  ;;  %p1168_p12 = scmp.lt.s32.totalorder %s1378_s30, 2 }
  0x11   : > { %s264_s19 = sand.u32 1, %s1374_s29   ;;  %s1252_s25 = scalar_lea.hbm %s1673_s0, 128 }
  0x12   : > { %p1496_p13 = pnand %p1159_p11, %p1682_p5  ;;  %p1502_p0 = pnand %p1168_p12, %p1472_p4 }
  0x13   : > { %s973_s22 = sshll.u32 %s264_s19, 6  ;;  %p1253_p1 = scmp.ne.s32.totalorder %s1673_s0, %s1252_s25 }
  0x14   : > { %s1690_s21 = scalar_select %p1502_p0, 1, 0 }
  0x15   : > { %p1254_p2 = pneg %p1496_p13  ;;  %p1259_p4 = scmp.lt.u32.totalorder %s1252_s25, %s1673_s0 }
  0x17   : > { %p1255_p3 = pnand %p1254_p2, %p1253_p1 }
  0x19   : > { %p1256_p6 = pneg %p1255_p3 }
  0x1b   : > { %p1261_p7 = pnand %p1259_p4, %p1256_p6 }
  0x1d   : > { %1264 = shalt.err (!%p1261_p7)
}
  0x1e   : > { %s1265_s14 = scalar_lea.vmem %s236_s18, 128  ;;  %p1273_p5 = scmp.lt.s32.totalorder %s236_s18, %s236_s18 }
  0x1f   : > { %p1266_p11 = scmp.ne.s32.totalorder %s236_s18, %s1265_s14  ;;  %p1274_p8 = scmp.lt.s32.totalorder %s1265_s14, %s1265_s14 }
  0x21   : > { %p1268_p12 = pnand %p1266_p11, %p1254_p2  ;;  %p1275_p10 = por %p1274_p8, %p1273_p5 }
  0x23   : > { %p1269_p9 = pneg %p1268_p12 }
  0x25   : > { %p1276_p0 = pnand %p1275_p10, %p1269_p9 }
  0x27   : > { %1279 = shalt.err (!%p1276_p0)
}
  0x28   : > { %1162 = dma.hbm_to_vmem [thread:$0]  (!%p1496_p13), %s1673_s0, 128, %s236_s18, [#allocation5]  }
  0x29   : > { %s1032_s24 = sshll.u32 %s1378_s30, 10  ;;  %s268_s11 = scalar_lea.vmem [#allocation7], %s973_s22 }
  0x2a   : > { %s1526_s27 = scalar_lea.hbm %s1674_s1, %s1032_s24  ;;  %s275_s12 = sshll.u32 %s268_s11, 4  ;;  %s1528_s12 = int_to_ptr.vmem [resolvable:$true] %s275_s12 }
  0x2b   : > { %s1530_s20 = scalar_lea.sflag [#allocation8], %s264_s19  ;;  %s1280_s14 = scalar_lea.hbm %s1526_s27, 1024 }
  0x2c   : > { %p1281_p5 = scmp.ne.s32.totalorder %s1526_s27, %s1280_s14  ;;  %p1691_p8 = scmp.ne.s32.totalorder %s1690_s21, 0 }
  0x2d   : > { %s1285_s17 = scalar_lea.hbm %s1674_s1, 2048  ;;  %p1286_p0 = scmp.lt.u32.totalorder %s1526_s27, %s1674_s1 }
  0x2e   : > { %p1282_p9 = pneg %p1691_p8  ;;  %p1287_p1 = scmp.lt.u32.totalorder %s1285_s17, %s1280_s14 }
  0x2f   : > { %p1289_p3 = scmp.lt.u32.totalorder %s1280_s14, %s1526_s27 }
  0x30   : > { %p1283_p10 = pnand %p1282_p9, %p1281_p5  ;;  %p1288_p2 = por %p1287_p1, %p1286_p0 }
  0x32   : > { %p1284_p13 = pneg %p1283_p10  ;;  %p1290_p6 = por %p1289_p3, %p1288_p2 }
  0x34   : > { %p1291_p4 = pnand %p1290_p6, %p1284_p13 }
  0x36   : > { %1294 = shalt.err (!%p1291_p4)
}
  0x37   : > { %s1295_s19 = scalar_lea.vmem %s1528_s12, 1024  ;;  %s1381_s22 = smov [#allocation7]  }
  0x38   : > { %p1296_p7 = scmp.ne.s32.totalorder %s1528_s12, %s1295_s19  ;;  %s1300_s25 = sshll.u32 %s1381_s22, 4  ;;  %s1301_s25 = int_to_ptr.vmem [resolvable:$false] %s1300_s25 }
  0x39   : > { %s1302_s26 = scalar_lea.vmem %s1301_s25, 2048  ;;  %p1303_p5 = scmp.lt.s32.totalorder %s1528_s12, %s1301_s25 }
  0x3a   : > { %p1298_p11 = pnand %p1296_p7, %p1282_p9  ;;  %p1304_p10 = scmp.lt.s32.totalorder %s1302_s26, %s1295_s19 }
  0x3c   : > { %p1299_p12 = pneg %p1298_p11  ;;  %p1305_p0 = por %p1304_p10, %p1303_p5 }
  0x3e   : > { %p1306_p1 = pnand %p1305_p0, %p1299_p12 }
  0x40   : > { %1309 = shalt.err (!%p1306_p1)
}
  0x41   : > { %s1382_s11 = smov 64   ;;  %s1383_s14 = smov 4  }
  0x42   : > { %1166 = dma.hbm_to_vmem [thread:$0]  (!%p1691_p8), %s1526_s27, 1024, %s1528_s12, %s1530_s20, %s1382_s11, %s1382_s11, %s1383_s14  }
  0x43   : > { %p1692_p9 = scmp.ne.s32.totalorder %s1688_s16, 0 }
  0x44   : > { %p1693_p13 = scmp.eq.s32.totalorder (!%p1692_p9), %s1457_s9, 0 }
  0x45   : > { %287 = sbr.rel (%p1692_p9) target bundleno = 1234 (0x4d2), region = 52 }
  0x4c   : > { %1353 = dma.done.wait (%p1693_p13), [#allocation5], 128   ;;  %p1694_p2 = pmov %p1693_p13 }
  0x4d   : > { %s293_s30 = sand.u32 1, %s1370_s28   ;;  %p1695_p3 = scmp.ne.s32.totalorder %s1687_s15, 0 }
  0x4e   : > { %1355 = vsyncadd (%p1694_p2), [#allocation5], 4294967168  ;;  %s978_s18 = sshll.u32 %s293_s30, 6  ;;  %s294_s17 = scalar_lea.sflag [#allocation8], %s293_s30 }
  0x4f   : > { %s1565_s23 = scalar_lea.vmem [#allocation7], %s978_s18 }
  0x50   : > { %1357 = dma.done.wait (%p1695_p3), %s294_s17, 1024  }
  0x51   : > { %1359 = vsyncadd (%p1695_p3), %s294_s17, 4294966272  ;;  %p1696_p8 = scmp.ne.s32.totalorder %s1457_s9, 0 }
  0x52   : > { %v1216_v0 = vld [vmem:[%s1565_s23] sm:$0xff] (!%p1696_p8)   ;;  %v1384_v1 = vmov (!%p1696_p8), 0.0   ;;  %v1217_v2 = vld [vmem:[%s1565_s23 + $0x8] sm:$0xff] (!%p1696_p8)   ;;  %vm1385_vm0 = vmmov (!%p1696_p8), 0   ;;  %v1218_v3 = vld [vmem:[%s1565_s23 + $0x10] sm:$0xff] (!%p1696_p8)   ;;  %s980_s15 = sshll.u32 (!%p1696_p8), %s1457_s9, 7 }
  0x53   : > { %330 = sbr.rel (%p1696_p8) target bundleno = 330 (0x14a), region = 64  ;;  %1069 = vmatprep.subr.bf16.mxu0 (!%p1696_p8), %v1384_v1  ;;  %1085 = vmatprep.mubr.msk.bf16.mxu0 (!%p1696_p8), %vm1385_vm0, %v1384_v1  ;;  %v1219_v4 = vld [vmem:[%s1565_s23 + $0x18] sm:$0xff] (!%p1696_p8)   ;;  %v1220_v5 = vld [vmem:[%s1565_s23 + $0x20] sm:$0xff] (!%p1696_p8)   ;;  %v1221_v6 = vld [vmem:[%s1565_s23 + $0x28] sm:$0xff] (!%p1696_p8)   ;;  %s348_s16 = sshra.s32 (!%p1696_p8), %s980_s15, 7 }
  0x54   : > { %1070 = vmatpush3.bf16.msra.mxu0 (!%p1696_p8), %v1216_v0  ;;  %v1222_v7 = vld [vmem:[%s1565_s23 + $0x30] sm:$0xff] (!%p1696_p8)   ;;  %v1223_v8 = vld [vmem:[%s1565_s23 + $0x38] sm:$0xff] (!%p1696_p8)   ;;  %s350_s21 = scalar_lea.vmem (!%p1696_p8), [#allocation4], %s348_s16  ;;  %v981_v11 = vld [vmem:[%s1675_s2] ss:$0 sm:$0xff] (!%p1696_p8) }
  0x55   : > { %1071 = vmatprep.subr.bf16.mxu0 (!%p1696_p8), %v1384_v1  ;;  %v351_v9 = vld [vmem:[%s350_s21] sm:$0xff] (!%p1696_p8) }
  0x56   : > { %v352_v10 = vpack.c.bf16 (!%p1696_p8), %v351_v9, %v351_v9 }
  0x58   : > { %1072 = vmatpush3.bf16.msra.mxu0 (!%p1696_p8), %v1217_v2 }
  0x59   : > { %1073 = vmatprep.subr.bf16.mxu0 (!%p1696_p8), %v1384_v1 }
  0x5c   : > { %1074 = vmatpush3.bf16.msra.mxu0 %v1218_v3 }
  0x5d   : > { %1075 = vmatprep.subr.bf16.mxu0 %v1384_v1 }
  0x60   : > { %1076 = vmatpush3.bf16.msra.mxu0 %v1219_v4 }
  0x61   : > { %1077 = vmatprep.subr.bf16.mxu0 %v1384_v1 }
  0x64   : > { %1078 = vmatpush3.bf16.msra.mxu0 %v1220_v5 }
  0x65   : > { %1079 = vmatprep.subr.bf16.mxu0 %v1384_v1 }
  0x68   : > { %1080 = vmatpush3.bf16.msra.mxu0 %v1221_v6 }
  0x69   : > { %1081 = vmatprep.subr.bf16.mxu0 %v1384_v1 }
  0x6c   : > { %1082 = vmatpush3.bf16.msra.mxu0 %v1222_v7 }
  0x6d   : > { %1083 = vmatprep.subr.bf16.mxu0 %v1384_v1 }
  0x70   : > { %1084 = vmatpush3.bf16.msra.mxu0 %v1223_v8 }
  0x73   : > { %1086 = vmatmul.mubr.bf16.vlgmr.msra.gmra.mrb[0].mxu0 %v352_v10 }
 0x146   : > { %v442_v12 = vpop.f32.mrb[0].mxu0 }
 0x147   : > { %v443_v13 = vadd.f32 %v981_v11, %v442_v12  ;;  %v1087_v14 = vpop.f32.mrb[1].mxu0 }
 0x148   : > { %v445_v15 = vpop.f32.mrb[2].mxu0 }
 0x149   : > { %448 = vst [vmem:[#allocation2] sm:$0xff] %v443_v13  ;;  %v1088_v16 = vpop.f32.mrb[3].mxu0 }
 0x14a PF: > { %p449_p6 = scmp.gt.s32.totalorder %s1457_s9, 0  ;;  %p450_p4 = scmp.lt.s32.totalorder %s1457_s9, 1 }
 0x14c   : > { %p451_p7 = pnand %p450_p4, %p449_p6 }
 0x14d   : > { %v1224_v17 = vld [vmem:[%s1565_s23] sm:$0xff] (!%p451_p7)   ;;  %v1386_v18 = vmov (!%p451_p7), 0.0   ;;  %v1225_v19 = vld [vmem:[%s1565_s23 + $0x8] sm:$0xff] (!%p451_p7)   ;;  %vm1387_vm1 = vmmov (!%p451_p7), 0   ;;  %v1226_v20 = vld [vmem:[%s1565_s23 + $0x10] sm:$0xff] (!%p451_p7)   ;;  %s990_s20 = sshll.u32 (!%p451_p7), %s1457_s9, 7 }
 0x14e   : > { %454 = sbr.rel (%p451_p7) target bundleno = 581 (0x245), region = 68  ;;  %1089 = vmatprep.subr.bf16.mxu0 (!%p451_p7), %v1386_v18  ;;  %1105 = vmatprep.mubr.msk.bf16.mxu0 (!%p451_p7), %vm1387_vm1, %v1386_v18  ;;  %v1227_v21 = vld [vmem:[%s1565_s23 + $0x18] sm:$0xff] (!%p451_p7)   ;;  %v1228_v22 = vld [vmem:[%s1565_s23 + $0x20] sm:$0xff] (!%p451_p7)   ;;  %v1229_v23 = vld [vmem:[%s1565_s23 + $0x28] sm:$0xff] (!%p451_p7)   ;;  %s472_s24 = sshra.s32 (!%p451_p7), %s990_s20, 7 }
 0x14f   : > { %1090 = vmatpush3.bf16.msra.mxu0 (!%p451_p7), %v1224_v17  ;;  %v1230_v24 = vld [vmem:[%s1565_s23 + $0x30] sm:$0xff] (!%p451_p7)   ;;  %v1231_v25 = vld [vmem:[%s1565_s23 + $0x38] sm:$0xff] (!%p451_p7)   ;;  %s474_s19 = scalar_lea.vmem (!%p451_p7), [#allocation4], %s472_s24 }
 0x150   : > { %1091 = vmatprep.subr.bf16.mxu0 (!%p451_p7), %v1386_v18  ;;  %v475_v26 = vld [vmem:[%s474_s19] sm:$0xff] (!%p451_p7) }
 0x151   : > { %v476_v27 = vpack.c.bf16 (!%p451_p7), %v475_v26, %v475_v26  ;;  %v565_v28 = vld [vmem:[#allocation2] sm:$0xff] (!%p451_p7) }
 0x153   : > { %1092 = vmatpush3.bf16.msra.mxu0 (!%p451_p7), %v1225_v19 }
 0x154   : > { %1093 = vmatprep.subr.bf16.mxu0 (!%p451_p7), %v1386_v18 }
 0x157   : > { %1094 = vmatpush3.bf16.msra.mxu0 %v1226_v20 }
 0x158   : > { %1095 = vmatprep.subr.bf16.mxu0 %v1386_v18 }
 0x15b   : > { %1096 = vmatpush3.bf16.msra.mxu0 %v1227_v21 }
 0x15c   : > { %1097 = vmatprep.subr.bf16.mxu0 %v1386_v18 }
 0x15f   : > { %1098 = vmatpush3.bf16.msra.mxu0 %v1228_v22 }
 0x160   : > { %1099 = vmatprep.subr.bf16.mxu0 %v1386_v18 }
 0x163   : > { %1100 = vmatpush3.bf16.msra.mxu0 %v1229_v23 }
 0x164   : > { %1101 = vmatprep.subr.bf16.mxu0 %v1386_v18 }
 0x167   : > { %1102 = vmatpush3.bf16.msra.mxu0 %v1230_v24 }
 0x168   : > { %1103 = vmatprep.subr.bf16.mxu0 %v1386_v18 }
 0x16b   : > { %1104 = vmatpush3.bf16.msra.mxu0 %v1231_v25 }
 0x16e   : > { %1106 = vmatmul.mubr.bf16.vlgmr.msra.gmra.mrb[0].mxu0 %v476_v27 }
 0x241   : > { %v559_v29 = vpop.f32.mrb[0].mxu0 }
 0x242   : > { %v566_v30 = vadd.f32 %v565_v28, %v559_v29  ;;  %v1107_v31 = vpop.f32.mrb[1].mxu0 }
 0x243   : > { %v562_v32 = vpop.f32.mrb[2].mxu0 }
 0x244   : > { %567 = vst [vmem:[#allocation2] sm:$0xff] %v566_v30  ;;  %v1108_v33 = vpop.f32.mrb[3].mxu0 }
 0x245 PF: > { %p1697_p11 = scmp.ne.s32.totalorder %s1457_s9, 0 }
 0x246   : > { %v594_v52 = vlaneseq (!%p1697_p11)  ;;  %v572_v54 = vld [vmem:[%s1676_s3] sm:$0x1] (!%p1697_p11) }
 0x247   : > { %570 = sbr.rel (%p1697_p11) target bundleno = 646 (0x286), region = 72  ;;  %v1000_v59 = vld [vmem:[%s1677_s4] ss:$0 sm:$0xff] (!%p1697_p11) }
 0x248   : > { %v595_v53 = vshrl.u32 (!%p1697_p11), %v594_v52, 7 }
 0x24a   : > { %v596_v55 = vsub.s32 (!%p1697_p11), 0, %v595_v53 }
 0x24b   : > { %v571_v34 = vld [vmem:[#allocation2] sm:$0xff] (!%p1697_p11) }
 0x24c   : > { %v574_v35 = vrot.slane (!%p1697_p11), %v571_v34, 4 }
 0x24e   : > { %v575_v36 = vadd.f32 %v574_v35, %v571_v34 }
 0x250   : > { %v576_v37 = vrot.slane %v575_v36, 2 }
 0x252   : > { %v577_v38 = vadd.f32 %v576_v37, %v575_v36 }
 0x254   : > { %v578_v39 = vrot.slane %v577_v38, 1 }
 0x256   : > { %v579_v40 = vadd.f32 %v578_v39, %v577_v38 }
 0x258   : > { %v580_v41 = vmul.f32 0.125, %v579_v40 }
 0x25a   : > { %v581_v42 = vsub.f32 %v571_v34, %v580_v41 }
 0x25c   : > { %v582_v43 = vmul.f32 %v581_v42, %v581_v42 }
 0x25e   : > { %v583_v44 = vrot.slane %v582_v43, 4 }
 0x260   : > { %v584_v45 = vadd.f32 %v583_v44, %v582_v43 }
 0x262   : > { %v585_v46 = vrot.slane %v584_v45, 2 }
 0x264   : > { %v586_v47 = vadd.f32 %v585_v46, %v584_v45 }
 0x266   : > { %v587_v48 = vrot.slane %v586_v47, 1 }
 0x268   : > { %v588_v49 = vadd.f32 %v587_v48, %v586_v47 }
 0x26a   : > { %v589_v50 = vmul.f32 0.125, %v588_v49 }
 0x26c   : > { %v590_v51 = vadd.f32 1e-05, %v589_v50 }
 0x26e   : > { %1232 = vrsqrt.f32 %v590_v51 }
 0x278   : > { %v1233_v56 = vpop.eup %1232 }
 0x279   : > { %v592_v57 = vmul.f32 %v1233_v56, %v572_v54 }
 0x27b   : > { %v597_v58 = vrot.slane %v592_v57, %v596_v55 }
 0x27d   : > { %v599_v60 = vmul.f32 %v597_v58, %v581_v42 }
 0x27f   : > { %v606_v61 = vadd.f32 %v1000_v59, %v599_v60 }
 0x281   : > { %v607_v62 = vmax.f32 %v606_v61, 0.0 }
 0x283   : > { %v608_v63 = vpack.c.bf16 %v607_v62, %v607_v62 }
 0x285   : > { %609 = vst [vmem:[#allocation3] sm:$0xf] %v608_v63 }
 0x286 PF: > { %p1001_p12 = scmp.ne.s32.totalorder %s1457_s9, 1 }
 0x287   : > { %v1234_v0 = vld [vmem:[%s1565_s23] sm:$0xff] (!%p1001_p12)   ;;  %v1388_v1 = vmov (!%p1001_p12), 0.0   ;;  %v1235_v2 = vld [vmem:[%s1565_s23 + $0x8] sm:$0xff] (!%p1001_p12)   ;;  %vm1389_vm2 = vmmov (!%p1001_p12), 0   ;;  %v1236_v3 = vld [vmem:[%s1565_s23 + $0x10] sm:$0xff] (!%p1001_p12)   ;;  %s1002_s14 = sadd.s32 (!%p1001_p12), 4294967295, %s1457_s9 }
 0x288   : > { %613 = sbr.rel (%p1001_p12) target bundleno = 895 (0x37f), region = 76  ;;  %1109 = vmatprep.subr.bf16.mxu0 (!%p1001_p12), %v1388_v1  ;;  %1125 = vmatprep.mubr.msk.bf16.mxu0 (!%p1001_p12), %vm1389_vm2, %v1388_v1  ;;  %v1237_v4 = vld [vmem:[%s1565_s23 + $0x18] sm:$0xff] (!%p1001_p12)   ;;  %v1238_v5 = vld [vmem:[%s1565_s23 + $0x20] sm:$0xff] (!%p1001_p12)   ;;  %v1239_v6 = vld [vmem:[%s1565_s23 + $0x28] sm:$0xff] (!%p1001_p12)   ;;  %s1003_s30 = sshll.u32 (!%p1001_p12), %s1002_s14, 7 }
 0x289   : > { %1110 = vmatpush3.bf16.msra.mxu0 (!%p1001_p12), %v1234_v0  ;;  %s632_s18 = sshra.s32 (!%p1001_p12), %s1003_s30, 7  ;;  %v1240_v7 = vld [vmem:[%s1565_s23 + $0x30] sm:$0xff] (!%p1001_p12)   ;;  %v1241_v8 = vld [vmem:[%s1565_s23 + $0x38] sm:$0xff] (!%p1001_p12)   ;;  %v1005_v10 = vld [vmem:[%s1678_s5] ss:$0 sm:$0xff] (!%p1001_p12) }
 0x28a   : > { %1111 = vmatprep.subr.bf16.mxu0 (!%p1001_p12), %v1388_v1  ;;  %s1004_s17 = sshll.u32 (!%p1001_p12), %s632_s18, 2 }
 0x28b   : > { %s635_s15 = scalar_lea.vmem (!%p1001_p12), [#allocation3], %s1004_s17 }
 0x28c   : > { %v636_v9 = vld [vmem:[%s635_s15] sm:$0xf] (!%p1001_p12) }
 0x28d   : > { %1112 = vmatpush3.bf16.msra.mxu0 (!%p1001_p12), %v1235_v2 }
 0x28e   : > { %1113 = vmatprep.subr.bf16.mxu0 (!%p1001_p12), %v1388_v1 }
 0x291   : > { %1114 = vmatpush3.bf16.msra.mxu0 %v1236_v3 }
 0x292   : > { %1115 = vmatprep.subr.bf16.mxu0 %v1388_v1 }
 0x295   : > { %1116 = vmatpush3.bf16.msra.mxu0 %v1237_v4 }
 0x296   : > { %1117 = vmatprep.subr.bf16.mxu0 %v1388_v1 }
 0x299   : > { %1118 = vmatpush3.bf16.msra.mxu0 %v1238_v5 }
 0x29a   : > { %1119 = vmatprep.subr.bf16.mxu0 %v1388_v1 }
 0x29d   : > { %1120 = vmatpush3.bf16.msra.mxu0 %v1239_v6 }
 0x29e   : > { %1121 = vmatprep.subr.bf16.mxu0 %v1388_v1 }
 0x2a1   : > { %1122 = vmatpush3.bf16.msra.mxu0 %v1240_v7 }
 0x2a2   : > { %1123 = vmatprep.subr.bf16.mxu0 %v1388_v1 }
 0x2a5   : > { %1124 = vmatpush3.bf16.msra.mxu0 %v1241_v8 }
 0x2a8   : > { %1126 = vmatmul.mubr.bf16.vlgmr.msra.gmra.mrb[0].mxu0 %v636_v9 }
 0x37b   : > { %v726_v11 = vpop.f32.mrb[0].mxu0 }
 0x37c   : > { %v727_v12 = vadd.f32 %v1005_v10, %v726_v11  ;;  %v1127_v13 = vpop.f32.mrb[1].mxu0 }
 0x37d   : > { %v729_v14 = vpop.f32.mrb[2].mxu0 }
 0x37e   : > { %732 = vst [vmem:[#allocation2] sm:$0xff] %v727_v12  ;;  %v1128_v15 = vpop.f32.mrb[3].mxu0 }
 0x37f PF: > { %p1014_p5 = scmp.le.s32.totalorder %s1457_s9, 1 }
 0x380   : > { %v1242_v16 = vld [vmem:[%s1565_s23] sm:$0xff] (!%p1014_p5)   ;;  %v1390_v17 = vmov (!%p1014_p5), 0.0   ;;  %v1243_v18 = vld [vmem:[%s1565_s23 + $0x8] sm:$0xff] (!%p1014_p5)   ;;  %vm1391_vm3 = vmmov (!%p1014_p5), 0   ;;  %v1244_v19 = vld [vmem:[%s1565_s23 + $0x10] sm:$0xff] (!%p1014_p5)   ;;  %s1015_s27 = sadd.s32 (!%p1014_p5), 4294967295, %s1457_s9 }
 0x381   : > { %736 = sbr.rel (%p1014_p5) target bundleno = 1144 (0x478), region = 80  ;;  %1129 = vmatprep.subr.bf16.mxu0 (!%p1014_p5), %v1390_v17  ;;  %1145 = vmatprep.mubr.msk.bf16.mxu0 (!%p1014_p5), %vm1391_vm3, %v1390_v17  ;;  %v1245_v20 = vld [vmem:[%s1565_s23 + $0x18] sm:$0xff] (!%p1014_p5)   ;;  %v1246_v21 = vld [vmem:[%s1565_s23 + $0x20] sm:$0xff] (!%p1014_p5)   ;;  %v1247_v22 = vld [vmem:[%s1565_s23 + $0x28] sm:$0xff] (!%p1014_p5)   ;;  %s1016_s12 = sshll.u32 (!%p1014_p5), %s1015_s27, 7 }
 0x382   : > { %1130 = vmatpush3.bf16.msra.mxu0 (!%p1014_p5), %v1242_v16  ;;  %s755_s20 = sshra.s32 (!%p1014_p5), %s1016_s12, 7  ;;  %v1248_v23 = vld [vmem:[%s1565_s23 + $0x30] sm:$0xff] (!%p1014_p5)   ;;  %v1249_v24 = vld [vmem:[%s1565_s23 + $0x38] sm:$0xff] (!%p1014_p5)  }
 0x383   : > { %1131 = vmatprep.subr.bf16.mxu0 (!%p1014_p5), %v1390_v17  ;;  %s1017_s24 = sshll.u32 (!%p1014_p5), %s755_s20, 2 }
 0x384   : > { %s758_s19 = scalar_lea.vmem (!%p1014_p5), [#allocation3], %s1017_s24 }
 0x385   : > { %v759_v25 = vld [vmem:[%s758_s19] sm:$0xf] (!%p1014_p5) }
 0x386   : > { %1132 = vmatpush3.bf16.msra.mxu0 (!%p1014_p5), %v1243_v18  ;;  %v848_v26 = vld [vmem:[#allocation2] sm:$0xff] (!%p1014_p5) }
 0x387   : > { %1133 = vmatprep.subr.bf16.mxu0 (!%p1014_p5), %v1390_v17 }
 0x38a   : > { %1134 = vmatpush3.bf16.msra.mxu0 %v1244_v19 }
 0x38b   : > { %1135 = vmatprep.subr.bf16.mxu0 %v1390_v17 }
 0x38e   : > { %1136 = vmatpush3.bf16.msra.mxu0 %v1245_v20 }
 0x38f   : > { %1137 = vmatprep.subr.bf16.mxu0 %v1390_v17 }
 0x392   : > { %1138 = vmatpush3.bf16.msra.mxu0 %v1246_v21 }
 0x393   : > { %1139 = vmatprep.subr.bf16.mxu0 %v1390_v17 }
 0x396   : > { %1140 = vmatpush3.bf16.msra.mxu0 %v1247_v22 }
 0x397   : > { %1141 = vmatprep.subr.bf16.mxu0 %v1390_v17 }
 0x39a   : > { %1142 = vmatpush3.bf16.msra.mxu0 %v1248_v23 }
 0x39b   : > { %1143 = vmatprep.subr.bf16.mxu0 %v1390_v17 }
 0x39e   : > { %1144 = vmatpush3.bf16.msra.mxu0 %v1249_v24 }
 0x3a1   : > { %1146 = vmatmul.mubr.bf16.vlgmr.msra.gmra.mrb[0].mxu0 %v759_v25 }
 0x474   : > { %v842_v27 = vpop.f32.mrb[0].mxu0 }
 0x475   : > { %v849_v28 = vadd.f32 %v848_v26, %v842_v27  ;;  %v1147_v29 = vpop.f32.mrb[1].mxu0 }
 0x476   : > { %v845_v30 = vpop.f32.mrb[2].mxu0 }
 0x477   : > { %850 = vst [vmem:[#allocation2] sm:$0xff] %v849_v28  ;;  %v1148_v31 = vpop.f32.mrb[3].mxu0 }
 0x478 PF: > { %853 = sbr.rel (%p1001_p12) target bundleno = 1209 (0x4b9), region = 84  ;;  %v877_v50 = vlaneseq (!%p1001_p12)  ;;  %v855_v52 = vld [vmem:[%s1679_s6] sm:$0x1] (!%p1001_p12)  ;;  %v890_v59 = vld [vmem:[#allocation4] sm:$0xff] (!%p1001_p12) }
 0x479   : > { %v1027_v57 = vld [vmem:[%s1680_s7] ss:$0 sm:$0xff] (!%p1001_p12) }
 0x47a   : > { %v878_v51 = vshrl.u32 (!%p1001_p12), %v877_v50, 7 }
 0x47c   : > { %v879_v53 = vsub.s32 (!%p1001_p12), 0, %v878_v51 }
 0x47e   : > { %v854_v32 = vld [vmem:[#allocation2] sm:$0xff] (!%p1001_p12) }
 0x47f   : > { %v857_v33 = vrot.slane %v854_v32, 4 }
 0x481   : > { %v858_v34 = vadd.f32 %v857_v33, %v854_v32 }
 0x483   : > { %v859_v35 = vrot.slane %v858_v34, 2 }
 0x485   : > { %v860_v36 = vadd.f32 %v859_v35, %v858_v34 }
 0x487   : > { %v861_v37 = vrot.slane %v860_v36, 1 }
 0x489   : > { %v862_v38 = vadd.f32 %v861_v37, %v860_v36 }
 0x48b   : > { %v863_v39 = vmul.f32 0.125, %v862_v38 }
 0x48d   : > { %v864_v40 = vsub.f32 %v854_v32, %v863_v39 }
 0x48f   : > { %v865_v41 = vmul.f32 %v864_v40, %v864_v40 }
 0x491   : > { %v866_v42 = vrot.slane %v865_v41, 4 }
 0x493   : > { %v867_v43 = vadd.f32 %v866_v42, %v865_v41 }
 0x495   : > { %v868_v44 = vrot.slane %v867_v43, 2 }
 0x497   : > { %v869_v45 = vadd.f32 %v868_v44, %v867_v43 }
 0x499   : > { %v870_v46 = vrot.slane %v869_v45, 1 }
 0x49b   : > { %v871_v47 = vadd.f32 %v870_v46, %v869_v45 }
 0x49d   : > { %v872_v48 = vmul.f32 0.125, %v871_v47 }
 0x49f   : > { %v873_v49 = vadd.f32 1e-05, %v872_v48 }
 0x4a1   : > { %1250 = vrsqrt.f32 %v873_v49 }
 0x4ab   : > { %v1251_v54 = vpop.eup %1250 }
 0x4ac   : > { %v875_v55 = vmul.f32 %v1251_v54, %v855_v52 }
 0x4ae   : > { %v880_v56 = vrot.slane %v875_v55, %v879_v53 }
 0x4b0   : > { %v882_v58 = vmul.f32 %v880_v56, %v864_v40 }
 0x4b2   : > { %v889_v60 = vadd.f32 %v1027_v57, %v882_v58 }
 0x4b4   : > { %v891_v61 = vadd.f32 %v890_v59, %v889_v60 }
 0x4b6   : > { %v892_v62 = vmax.f32 %v891_v61, 0.0 }
 0x4b8   : > { %893 = vst [vmem:[#allocation9] sm:$0xff] %v892_v62 }
 0x4b9 PF: > { %p1170_p10 = scmp.eq.s32.totalorder %s1457_s9, 1  ;;  %s1392_s11 = smov [#allocation9]  }
 0x4ba   : > { %s901_s14 = sshll.u32 %s1392_s11, 4  ;;  %s902_s14 = int_to_ptr.vmem [resolvable:$true] %s901_s14 }
 0x4bb   : > { %s1310_s30 = scalar_lea.vmem %s902_s14, 128  ;;  %p1317_p13 = scmp.lt.s32.totalorder %s902_s14, %s902_s14 }
 0x4bc   : > { %p1311_p0 = scmp.ne.s32.totalorder %s902_s14, %s1310_s30  ;;  %p1318_p2 = scmp.lt.s32.totalorder %s1310_s30, %s1310_s30 }
 0x4be   : > { %p1312_p1 = pnand %p1311_p0, %p1170_p10  ;;  %p1319_p3 = por %p1318_p2, %p1317_p13 }
 0x4c0   : > { %p1313_p9 = pneg %p1312_p1 }
 0x4c2   : > { %p1320_p8 = pnand %p1319_p3, %p1313_p9 }
 0x4c4   : > { %1323 = shalt.err (!%p1320_p8)
}
 0x4c5   : > { %s1324_s15 = scalar_lea.hbm %s1681_s8, 128 }
 0x4c6   : > { %p1325_p6 = scmp.ne.s32.totalorder %s1681_s8, %s1324_s15  ;;  %p1330_p11 = scmp.lt.u32.totalorder %s1324_s15, %s1681_s8 }
 0x4c8   : > { %p1326_p4 = pnand %p1325_p6, %p1170_p10 }
 0x4ca   : > { %p1327_p7 = pneg %p1326_p4 }
 0x4cc   : > { %p1332_p12 = pnand %p1330_p11, %p1327_p7 }
 0x4ce   : > { %1335 = shalt.err (!%p1332_p12)
}
 0x4cf   : > { %1156 = dma.vmem_to_hbm [thread:$0]  (%p1170_p10), %s902_s14, 128, %s1681_s8, [#allocation6]  }
 0x4d0   : > { %1361 = dma.done.wait (%p1170_p10), [#allocation6], 128  }
 0x4d1   : > { %1363 = vsyncadd (%p1170_p10), [#allocation6], 4294967168 }
 0x4d2 PF: > { %p20_p5 = scmp.ge.s32.totalorder %s1460_s10, 4   ;;  %s1698_s27 = smov %s1370_s28 }
 0x4d3   : > { %s1699_s28 = smov %s1374_s29  ;;  %s1700_s29 = smov %s1470_s13 }
 0x4d4   : > { %s1701_s30 = smov %s1460_s10  ;;  %22 = sbr.rel (!%p20_p5) target bundleno = 5 (0x5), region = 122 }
 0x4db   :  { %914 = vsyncpa [#allocation5], 1 }
 0x4dc   :  { %916 = vsyncpa [#allocation5 + $0x1], 1 }
 0x4dd   :  { %917 = vsyncpa [#allocation8], 1 }
 0x4de   :  { %919 = vsyncpa [#allocation8 + $0x1], 1 }
 0x4df   :  { %920 = vsyncpa [#allocation6], 1 }
 0x4e0   :  { %922 = vsyncpa [#allocation6 + $0x1], 1 }

// kernel: tpu_custom_call.1
= control target key start
LH: loop header
LB: loop body
LE: loop exit
PB: predicated region body
PF: predicated region fallthrough
CT: control target
= control target key end

     0   :  { %13 = vsyncpa [#allocation5], 0  ;;  %s1673_s0 = inlined_call_operand.hbm [shape: f32[8,128], index: 0, kind: input, shape index: {}]   ;;  %s1674_s1 = inlined_call_operand.hbm [shape: bf16[256,128], index: 1, kind: input, shape index: {}]   ;;  %s1675_s2 = inlined_call_operand.vmem [shape: f32[1,128], index: 2, kind: input, shape index: {}]   ;;  %s1676_s3 = inlined_call_operand.vmem [shape: f32[1,128], index: 3, kind: input, shape index: {}]   ;;  %s1677_s4 = inlined_call_operand.vmem [shape: f32[1,128], index: 4, kind: input, shape index: {}]   ;;  %s1678_s5 = inlined_call_operand.vmem [shape: f32[1,128], index: 5, kind: input, shape index: {}]   ;;  %s1679_s6 = inlined_call_operand.vmem [shape: f32[1,128], index: 6, kind: input, shape index: {}]   ;;  %s1680_s7 = inlined_call_operand.vmem [shape: f32[1,128], index: 7, kind: input, shape index: {}]   ;;  %s1681_s8 = inlined_call_operand.hbm [shape: f32[8,128], index: 8, kind: output, shape index: {}]  }
   0x1   :  { %14 = vsyncpa [#allocation8], 0 }
   0x2   :  { %16 = vsyncpa [#allocation8 + $0x1], 0 }
   0x3   :  { %17 = vsyncpa [#allocation6], 0  ;;  %s1438_s27 = smov 0   ;;  %s1440_s28 = smov 0  }
   0x4   :  { %s1442_s29 = smov 0   ;;  %s1444_s30 = smov 0  }
   0x5 LB: > { %s1457_s9 = sadd.s32 4294967295, %s1378_s30   ;;  %s1460_s10 = sadd.s32 1, %s1378_s30   ;;  %s1378_s30 = sphi %s1444_s30, %s1701_s30   ;;  %s1374_s29 = sphi %s1442_s29, %s1700_s29   ;;  %s1370_s28 = sphi %s1440_s28, %s1699_s28   ;;  %s1366_s27 = sphi %s1438_s27, %s1698_s27  }
   0x6   : > { %s48_s11 = ssub.s32 %s1378_s30, %s1460_s10  ;;  %s51_s12 = sadd.s32 1, %s1374_s29 }
   0x7   : > { %p49_p0 = scmp.eq.s32.totalorder %s48_s11, 0  ;;  %p58_p1 = scmp.ne.s32.totalorder %s1374_s29, %s1370_s28 }
   0x8   : > { %p59_p2 = scmp.eq.s32.totalorder %s1378_s30, 0  ;;  %p64_p3 = scmp.ne.s32.totalorder %s1370_s28, %s1366_s27 }
   0x9   : > { %s1470_s13 = scalar_select %p49_p0, %s1374_s29, %s51_s12  }
   0xa   : > { %p1472_p4 = por %p59_p2, %p58_p1  ;;  %p1682_p5 = scmp.eq.s32.totalorder %s1457_s9, 0 }
   0xb   : > { %p970_p6 = scmp.ge.s32.totalorder %s1378_s30, 1  ;;  %p222_p7 = scmp.lt.s32.totalorder %s1378_s30, 3 }
   0xc   : > { %p1481_p8 = por %p1682_p5, %p64_p3  ;;  %s1380_s17 = smov [#allocation4]  }
   0xd   : > { %p1486_p10 = pnand %p970_p6, %p222_p7  ;;  %s235_s18 = sshll.u32 %s1380_s17, 4  ;;  %s236_s18 = int_to_ptr.vmem [resolvable:$true] %s235_s18 }
   0xe   : > { %s1687_s15 = scalar_select %p1481_p8, 1, 0 }
   0xf   : > { %s1688_s16 = scalar_select %p1486_p10, 1, 0 }
  0x10   : > { %p1159_p11 = pneg %p1486_p10  ;;  %p1168_p12 = scmp.lt.s32.totalorder %s1378_s30, 2 }
  0x11   : > { %s264_s19 = sand.u32 1, %s1374_s29   ;;  %s1252_s25 = scalar_lea.hbm %s1673_s0, 128 }
  0x12   : > { %p1496_p13 = pnand %p1159_p11, %p1682_p5  ;;  %p1502_p0 = pnand %p1168_p12, %p1472_p4 }
  0x13   : > { %s973_s22 = sshll.u32 %s264_s19, 6  ;;  %p1253_p1 = scmp.ne.s32.totalorder %s1673_s0, %s1252_s25 }
  0x14   : > { %s1690_s21 = scalar_select %p1502_p0, 1, 0 }
  0x15   : > { %p1254_p2 = pneg %p1496_p13  ;;  %p1259_p4 = scmp.lt.u32.totalorder %s1252_s25, %s1673_s0 }
  0x17   : > { %p1255_p3 = pnand %p1254_p2, %p1253_p1 }
  0x19   : > { %p1256_p6 = pneg %p1255_p3 }
  0x1b   : > { %p1261_p7 = pnand %p1259_p4, %p1256_p6 }
  0x1d   : > { %1264 = shalt.err (!%p1261_p7)
}
  0x1e   : > { %s1265_s14 = scalar_lea.vmem %s236_s18, 128  ;;  %p1273_p5 = scmp.lt.s32.totalorder %s236_s18, %s236_s18 }
  0x1f   : > { %p1266_p11 = scmp.ne.s32.totalorder %s236_s18, %s1265_s14  ;;  %p1274_p8 = scmp.lt.s32.totalorder %s1265_s14, %s1265_s14 }
  0x21   : > { %p1268_p12 = pnand %p1266_p11, %p1254_p2  ;;  %p1275_p10 = por %p1274_p8, %p1273_p5 }
  0x23   : > { %p1269_p9 = pneg %p1268_p12 }
  0x25   : > { %p1276_p0 = pnand %p1275_p10, %p1269_p9 }
  0x27   : > { %1279 = shalt.err (!%p1276_p0)
}
  0x28   : > { %1162 = dma.hbm_to_vmem [thread:$0]  (!%p1496_p13), %s1673_s0, 128, %s236_s18, [#allocation5]  }
  0x29   : > { %s1032_s24 = sshll.u32 %s1378_s30, 10  ;;  %s268_s11 = scalar_lea.vmem [#allocation7], %s973_s22 }
  0x2a   : > { %s1526_s27 = scalar_lea.hbm %s1674_s1, %s1032_s24  ;;  %s275_s12 = sshll.u32 %s268_s11, 4  ;;  %s1528_s12 = int_to_ptr.vmem [resolvable:$true] %s275_s12 }
  0x2b   : > { %s1530_s20 = scalar_lea.sflag [#allocation8], %s264_s19  ;;  %s1280_s14 = scalar_lea.hbm %s1526_s27, 1024 }
  0x2c   : > { %p1281_p5 = scmp.ne.s32.totalorder %s1526_s27, %s1280_s14  ;;  %p1691_p8 = scmp.ne.s32.totalorder %s1690_s21, 0 }
  0x2d   : > { %s1285_s17 = scalar_lea.hbm %s1674_s1, 2048  ;;  %p1286_p0 = scmp.lt.u32.totalorder %s1526_s27, %s1674_s1 }
  0x2e   : > { %p1282_p9 = pneg %p1691_p8  ;;  %p1287_p1 = scmp.lt.u32.totalorder %s1285_s17, %s1280_s14 }
  0x2f   : > { %p1289_p3 = scmp.lt.u32.totalorder %s1280_s14, %s1526_s27 }
  0x30   : > { %p1283_p10 = pnand %p1282_p9, %p1281_p5  ;;  %p1288_p2 = por %p1287_p1, %p1286_p0 }
  0x32   : > { %p1284_p13 = pneg %p1283_p10  ;;  %p1290_p6 = por %p1289_p3, %p1288_p2 }
  0x34   : > { %p1291_p4 = pnand %p1290_p6, %p1284_p13 }
  0x36   : > { %1294 = shalt.err (!%p1291_p4)
}
  0x37   : > { %s1295_s19 = scalar_lea.vmem %s1528_s12, 1024  ;;  %s1381_s22 = smov [#allocation7]  }
  0x38   : > { %p1296_p7 = scmp.ne.s32.totalorder %s1528_s12, %s1295_s19  ;;  %s1300_s25 = sshll.u32 %s1381_s22, 4  ;;  %s1301_s25 = int_to_ptr.vmem [resolvable:$false] %s1300_s25 }
  0x39   : > { %s1302_s26 = scalar_lea.vmem %s1301_s25, 2048  ;;  %p1303_p5 = scmp.lt.s32.totalorder %s1528_s12, %s1301_s25 }
  0x3a   : > { %p1298_p11 = pnand %p1296_p7, %p1282_p9  ;;  %p1304_p10 = scmp.lt.s32.totalorder %s1302_s26, %s1295_s19 }
  0x3c   : > { %p1299_p12 = pneg %p1298_p11  ;;  %p1305_p0 = por %p1304_p10, %p1303_p5 }
  0x3e   : > { %p1306_p1 = pnand %p1305_p0, %p1299_p12 }
  0x40   : > { %1309 = shalt.err (!%p1306_p1)
}
  0x41   : > { %s1382_s11 = smov 64   ;;  %s1383_s14 = smov 4  }
  0x42   : > { %1166 = dma.hbm_to_vmem [thread:$0]  (!%p1691_p8), %s1526_s27, 1024, %s1528_s12, %s1530_s20, %s1382_s11, %s1382_s11, %s1383_s14  }
  0x43   : > { %p1692_p9 = scmp.ne.s32.totalorder %s1688_s16, 0 }
  0x44   : > { %p1693_p13 = scmp.eq.s32.totalorder (!%p1692_p9), %s1457_s9, 0 }
  0x45   : > { %287 = sbr.rel (%p1692_p9) target bundleno = 1234 (0x4d2), region = 52 }
  0x4c   : > { %1353 = dma.done.wait (%p1693_p13), [#allocation5], 128   ;;  %p1694_p2 = pmov %p1693_p13 }
  0x4d   : > { %s293_s30 = sand.u32 1, %s1370_s28   ;;  %p1695_p3 = scmp.ne.s32.totalorder %s1687_s15, 0 }
  0x4e   : > { %1355 = vsyncadd (%p1694_p2), [#allocation5], 4294967168  ;;  %s978_s18 = sshll.u32 %s293_s30, 6  ;;  %s294_s17 = scalar_lea.sflag [#allocation8], %s293_s30 }
  0x4f   : > { %s1565_s23 = scalar_lea.vmem [#allocation7], %s978_s18 }
  0x50   : > { %1357 = dma.done.wait (%p1695_p3), %s294_s17, 1024  }
  0x51   : > { %1359 = vsyncadd (%p1695_p3), %s294_s17, 4294966272  ;;  %p1696_p8 = scmp.ne.s32.totalorder %s1457_s9, 0 }
  0x52   : > { %v1216_v0 = vld [vmem:[%s1565_s23] sm:$0xff] (!%p1696_p8)   ;;  %v1384_v1 = vmov (!%p1696_p8), 0.0   ;;  %v1217_v2 = vld [vmem:[%s1565_s23 + $0x8] sm:$0xff] (!%p1696_p8)   ;;  %vm1385_vm0 = vmmov (!%p1696_p8), 0   ;;  %v1218_v3 = vld [vmem:[%s1565_s23 + $0x10] sm:$0xff] (!%p1696_p8)   ;;  %s980_s15 = sshll.u32 (!%p1696_p8), %s1457_s9, 7 }
  0x53   : > { %330 = sbr.rel (%p1696_p8) target bundleno = 330 (0x14a), region = 64  ;;  %1069 = vmatprep.subr.bf16.mxu0 (!%p1696_p8), %v1384_v1  ;;  %1085 = vmatprep.mubr.msk.bf16.mxu0 (!%p1696_p8), %vm1385_vm0, %v1384_v1  ;;  %v1219_v4 = vld [vmem:[%s1565_s23 + $0x18] sm:$0xff] (!%p1696_p8)   ;;  %v1220_v5 = vld [vmem:[%s1565_s23 + $0x20] sm:$0xff] (!%p1696_p8)   ;;  %v1221_v6 = vld [vmem:[%s1565_s23 + $0x28] sm:$0xff] (!%p1696_p8)   ;;  %s348_s16 = sshra.s32 (!%p1696_p8), %s980_s15, 7 }
  0x54   : > { %1070 = vmatpush3.bf16.msra.mxu0 (!%p1696_p8), %v1216_v0  ;;  %v1222_v7 = vld [vmem:[%s1565_s23 + $0x30] sm:$0xff] (!%p1696_p8)   ;;  %v1223_v8 = vld [vmem:[%s1565_s23 + $0x38] sm:$0xff] (!%p1696_p8)   ;;  %s350_s21 = scalar_lea.vmem (!%p1696_p8), [#allocation4], %s348_s16  ;;  %v981_v11 = vld [vmem:[%s1675_s2] ss:$0 sm:$0xff] (!%p1696_p8) }
  0x55   : > { %1071 = vmatprep.subr.bf16.mxu0 (!%p1696_p8), %v1384_v1  ;;  %v351_v9 = vld [vmem:[%s350_s21] sm:$0xff] (!%p1696_p8) }
  0x56   : > { %v352_v10 = vpack.c.bf16 (!%p1696_p8), %v351_v9, %v351_v9 }
  0x58   : > { %1072 = vmatpush3.bf16.msra.mxu0 (!%p1696_p8), %v1217_v2 }
  0x59   : > { %1073 = vmatprep.subr.bf16.mxu0 (!%p1696_p8), %v1384_v1 }
  0x5c   : > { %1074 = vmatpush3.bf16.msra.mxu0 %v1218_v3 }
  0x5d   : > { %1075 = vmatprep.subr.bf16.mxu0 %v1384_v1 }
  0x60   : > { %1076 = vmatpush3.bf16.msra.mxu0 %v1219_v4 }
  0x61   : > { %1077 = vmatprep.subr.bf16.mxu0 %v1384_v1 }
  0x64   : > { %1078 = vmatpush3.bf16.msra.mxu0 %v1220_v5 }
  0x65   : > { %1079 = vmatprep.subr.bf16.mxu0 %v1384_v1 }
  0x68   : > { %1080 = vmatpush3.bf16.msra.mxu0 %v1221_v6 }
  0x69   : > { %1081 = vmatprep.subr.bf16.mxu0 %v1384_v1 }
  0x6c   : > { %1082 = vmatpush3.bf16.msra.mxu0 %v1222_v7 }
  0x6d   : > { %1083 = vmatprep.subr.bf16.mxu0 %v1384_v1 }
  0x70   : > { %1084 = vmatpush3.bf16.msra.mxu0 %v1223_v8 }
  0x73   : > { %1086 = vmatmul.mubr.bf16.vlgmr.msra.gmra.mrb[0].mxu0 %v352_v10 }
 0x146   : > { %v442_v12 = vpop.f32.mrb[0].mxu0 }
 0x147   : > { %v443_v13 = vadd.f32 %v981_v11, %v442_v12  ;;  %v1087_v14 = vpop.f32.mrb[1].mxu0 }
 0x148   : > { %v445_v15 = vpop.f32.mrb[2].mxu0 }
 0x149   : > { %448 = vst [vmem:[#allocation2] sm:$0xff] %v443_v13  ;;  %v1088_v16 = vpop.f32.mrb[3].mxu0 }
 0x14a PF: > { %p449_p6 = scmp.gt.s32.totalorder %s1457_s9, 0  ;;  %p450_p4 = scmp.lt.s32.totalorder %s1457_s9, 1 }
 0x14c   : > { %p451_p7 = pnand %p450_p4, %p449_p6 }
 0x14d   : > { %v1224_v17 = vld [vmem:[%s1565_s23] sm:$0xff] (!%p451_p7)   ;;  %v1386_v18 = vmov (!%p451_p7), 0.0   ;;  %v1225_v19 = vld [vmem:[%s1565_s23 + $0x8] sm:$0xff] (!%p451_p7)   ;;  %vm1387_vm1 = vmmov (!%p451_p7), 0   ;;  %v1226_v20 = vld [vmem:[%s1565_s23 + $0x10] sm:$0xff] (!%p451_p7)   ;;  %s990_s20 = sshll.u32 (!%p451_p7), %s1457_s9, 7 }
 0x14e   : > { %454 = sbr.rel (%p451_p7) target bundleno = 581 (0x245), region = 68  ;;  %1089 = vmatprep.subr.bf16.mxu0 (!%p451_p7), %v1386_v18  ;;  %1105 = vmatprep.mubr.msk.bf16.mxu0 (!%p451_p7), %vm1387_vm1, %v1386_v18  ;;  %v1227_v21 = vld [vmem:[%s1565_s23 + $0x18] sm:$0xff] (!%p451_p7)   ;;  %v1228_v22 = vld [vmem:[%s1565_s23 + $0x20] sm:$0xff] (!%p451_p7)   ;;  %v1229_v23 = vld [vmem:[%s1565_s23 + $0x28] sm:$0xff] (!%p451_p7)   ;;  %s472_s24 = sshra.s32 (!%p451_p7), %s990_s20, 7 }
 0x14f   : > { %1090 = vmatpush3.bf16.msra.mxu0 (!%p451_p7), %v1224_v17  ;;  %v1230_v24 = vld [vmem:[%s1565_s23 + $0x30] sm:$0xff] (!%p451_p7)   ;;  %v1231_v25 = vld [vmem:[%s1565_s23 + $0x38] sm:$0xff] (!%p451_p7)   ;;  %s474_s19 = scalar_lea.vmem (!%p451_p7), [#allocation4], %s472_s24 }
 0x150   : > { %1091 = vmatprep.subr.bf16.mxu0 (!%p451_p7), %v1386_v18  ;;  %v475_v26 = vld [vmem:[%s474_s19] sm:$0xff] (!%p451_p7) }
 0x151   : > { %v476_v27 = vpack.c.bf16 (!%p451_p7), %v475_v26, %v475_v26  ;;  %v565_v28 = vld [vmem:[#allocation2] sm:$0xff] (!%p451_p7) }
 0x153   : > { %1092 = vmatpush3.bf16.msra.mxu0 (!%p451_p7), %v1225_v19 }
 0x154   : > { %1093 = vmatprep.subr.bf16.mxu0 (!%p451_p7), %v1386_v18 }
 0x157   : > { %1094 = vmatpush3.bf16.msra.mxu0 %v1226_v20 }
 0x158   : > { %1095 = vmatprep.subr.bf16.mxu0 %v1386_v18 }
 0x15b   : > { %1096 = vmatpush3.bf16.msra.mxu0 %v1227_v21 }
 0x15c   : > { %1097 = vmatprep.subr.bf16.mxu0 %v1386_v18 }
 0x15f   : > { %1098 = vmatpush3.bf16.msra.mxu0 %v1228_v22 }
 0x160   : > { %1099 = vmatprep.subr.bf16.mxu0 %v1386_v18 }
 0x163   : > { %1100 = vmatpush3.bf16.msra.mxu0 %v1229_v23 }
 0x164   : > { %1101 = vmatprep.subr.bf16.mxu0 %v1386_v18 }
 0x167   : > { %1102 = vmatpush3.bf16.msra.mxu0 %v1230_v24 }
 0x168   : > { %1103 = vmatprep.subr.bf16.mxu0 %v1386_v18 }
 0x16b   : > { %1104 = vmatpush3.bf16.msra.mxu0 %v1231_v25 }
 0x16e   : > { %1106 = vmatmul.mubr.bf16.vlgmr.msra.gmra.mrb[0].mxu0 %v476_v27 }
 0x241   : > { %v559_v29 = vpop.f32.mrb[0].mxu0 }
 0x242   : > { %v566_v30 = vadd.f32 %v565_v28, %v559_v29  ;;  %v1107_v31 = vpop.f32.mrb[1].mxu0 }
 0x243   : > { %v562_v32 = vpop.f32.mrb[2].mxu0 }
 0x244   : > { %567 = vst [vmem:[#allocation2] sm:$0xff] %v566_v30  ;;  %v1108_v33 = vpop.f32.mrb[3].mxu0 }
 0x245 PF: > { %p1697_p11 = scmp.ne.s32.totalorder %s1457_s9, 0 }
 0x246   : > { %v594_v52 = vlaneseq (!%p1697_p11)  ;;  %v572_v54 = vld [vmem:[%s1676_s3] sm:$0x1] (!%p1697_p11) }
 0x247   : > { %570 = sbr.rel (%p1697_p11) target bundleno = 646 (0x286), region = 72  ;;  %v1000_v59 = vld [vmem:[%s1677_s4] ss:$0 sm:$0xff] (!%p1697_p11) }
 0x248   : > { %v595_v53 = vshrl.u32 (!%p1697_p11), %v594_v52, 7 }
 0x24a   : > { %v596_v55 = vsub.s32 (!%p1697_p11), 0, %v595_v53 }
 0x24b   : > { %v571_v34 = vld [vmem:[#allocation2] sm:$0xff] (!%p1697_p11) }
 0x24c   : > { %v574_v35 = vrot.slane (!%p1697_p11), %v571_v34, 4 }
 0x24e   : > { %v575_v36 = vadd.f32 %v574_v35, %v571_v34 }
 0x250   : > { %v576_v37 = vrot.slane %v575_v36, 2 }
 0x252   : > { %v577_v38 = vadd.f32 %v576_v37, %v575_v36 }
 0x254   : > { %v578_v39 = vrot.slane %v577_v38, 1 }
 0x256   : > { %v579_v40 = vadd.f32 %v578_v39, %v577_v38 }
 0x258   : > { %v580_v41 = vmul.f32 0.125, %v579_v40 }
 0x25a   : > { %v581_v42 = vsub.f32 %v571_v34, %v580_v41 }
 0x25c   : > { %v582_v43 = vmul.f32 %v581_v42, %v581_v42 }
 0x25e   : > { %v583_v44 = vrot.slane %v582_v43, 4 }
 0x260   : > { %v584_v45 = vadd.f32 %v583_v44, %v582_v43 }
 0x262   : > { %v585_v46 = vrot.slane %v584_v45, 2 }
 0x264   : > { %v586_v47 = vadd.f32 %v585_v46, %v584_v45 }
 0x266   : > { %v587_v48 = vrot.slane %v586_v47, 1 }
 0x268   : > { %v588_v49 = vadd.f32 %v587_v48, %v586_v47 }
 0x26a   : > { %v589_v50 = vmul.f32 0.125, %v588_v49 }
 0x26c   : > { %v590_v51 = vadd.f32 1e-05, %v589_v50 }
 0x26e   : > { %1232 = vrsqrt.f32 %v590_v51 }
 0x278   : > { %v1233_v56 = vpop.eup %1232 }
 0x279   : > { %v592_v57 = vmul.f32 %v1233_v56, %v572_v54 }
 0x27b   : > { %v597_v58 = vrot.slane %v592_v57, %v596_v55 }
 0x27d   : > { %v599_v60 = vmul.f32 %v597_v58, %v581_v42 }
 0x27f   : > { %v606_v61 = vadd.f32 %v1000_v59, %v599_v60 }
 0x281   : > { %v607_v62 = vmax.f32 %v606_v61, 0.0 }
 0x283   : > { %v608_v63 = vpack.c.bf16 %v607_v62, %v607_v62 }
 0x285   : > { %609 = vst [vmem:[#allocation3] sm:$0xf] %v608_v63 }
 0x286 PF: > { %p1001_p12 = scmp.ne.s32.totalorder %s1457_s9, 1 }
 0x287   : > { %v1234_v0 = vld [vmem:[%s1565_s23] sm:$0xff] (!%p1001_p12)   ;;  %v1388_v1 = vmov (!%p1001_p12), 0.0   ;;  %v1235_v2 = vld [vmem:[%s1565_s23 + $0x8] sm:$0xff] (!%p1001_p12)   ;;  %vm1389_vm2 = vmmov (!%p1001_p12), 0   ;;  %v1236_v3 = vld [vmem:[%s1565_s23 + $0x10] sm:$0xff] (!%p1001_p12)   ;;  %s1002_s14 = sadd.s32 (!%p1001_p12), 4294967295, %s1457_s9 }
 0x288   : > { %613 = sbr.rel (%p1001_p12) target bundleno = 895 (0x37f), region = 76  ;;  %1109 = vmatprep.subr.bf16.mxu0 (!%p1001_p12), %v1388_v1  ;;  %1125 = vmatprep.mubr.msk.bf16.mxu0 (!%p1001_p12), %vm1389_vm2, %v1388_v1  ;;  %v1237_v4 = vld [vmem:[%s1565_s23 + $0x18] sm:$0xff] (!%p1001_p12)   ;;  %v1238_v5 = vld [vmem:[%s1565_s23 + $0x20] sm:$0xff] (!%p1001_p12)   ;;  %v1239_v6 = vld [vmem:[%s1565_s23 + $0x28] sm:$0xff] (!%p1001_p12)   ;;  %s1003_s30 = sshll.u32 (!%p1001_p12), %s1002_s14, 7 }
 0x289   : > { %1110 = vmatpush3.bf16.msra.mxu0 (!%p1001_p12), %v1234_v0  ;;  %s632_s18 = sshra.s32 (!%p1001_p12), %s1003_s30, 7  ;;  %v1240_v7 = vld [vmem:[%s1565_s23 + $0x30] sm:$0xff] (!%p1001_p12)   ;;  %v1241_v8 = vld [vmem:[%s1565_s23 + $0x38] sm:$0xff] (!%p1001_p12)   ;;  %v1005_v10 = vld [vmem:[%s1678_s5] ss:$0 sm:$0xff] (!%p1001_p12) }
 0x28a   : > { %1111 = vmatprep.subr.bf16.mxu0 (!%p1001_p12), %v1388_v1  ;;  %s1004_s17 = sshll.u32 (!%p1001_p12), %s632_s18, 2 }
 0x28b   : > { %s635_s15 = scalar_lea.vmem (!%p1001_p12), [#allocation3], %s1004_s17 }
 0x28c   : > { %v636_v9 = vld [vmem:[%s635_s15] sm:$0xf] (!%p1001_p12) }
 0x28d   : > { %1112 = vmatpush3.bf16.msra.mxu0 (!%p1001_p12), %v1235_v2 }
 0x28e   : > { %1113 = vmatprep.subr.bf16.mxu0 (!%p1001_p12), %v1388_v1 }
 0x291   : > { %1114 = vmatpush3.bf16.msra.mxu0 %v1236_v3 }
 0x292   : > { %1115 = vmatprep.subr.bf16.mxu0 %v1388_v1 }
 0x295   : > { %1116 = vmatpush3.bf16.msra.mxu0 %v1237_v4 }
 0x296   : > { %1117 = vmatprep.subr.bf16.mxu0 %v1388_v1 }
 0x299   : > { %1118 = vmatpush3.bf16.msra.mxu0 %v1238_v5 }
 0x29a   : > { %1119 = vmatprep.subr.bf16.mxu0 %v1388_v1 }
 0x29d   : > { %1120 = vmatpush3.bf16.msra.mxu0 %v1239_v6 }
 0x29e   : > { %1121 = vmatprep.subr.bf16.mxu0 %v1388_v1 }
 0x2a1   : > { %1122 = vmatpush3.bf16.msra.mxu0 %v1240_v7 }
 0x2a2   : > { %1123 = vmatprep.subr.bf16.mxu0 %v1388_v1 }
 0x2a5   : > { %1124 = vmatpush3.bf16.msra.mxu0 %v1241_v8 }
 0x2a8   : > { %1126 = vmatmul.mubr.bf16.vlgmr.msra.gmra.mrb[0].mxu0 %v636_v9 }
 0x37b   : > { %v726_v11 = vpop.f32.mrb[0].mxu0 }
 0x37c   : > { %v727_v12 = vadd.f32 %v1005_v10, %v726_v11  ;;  %v1127_v13 = vpop.f32.mrb[1].mxu0 }
 0x37d   : > { %v729_v14 = vpop.f32.mrb[2].mxu0 }
 0x37e   : > { %732 = vst [vmem:[#allocation2] sm:$0xff] %v727_v12  ;;  %v1128_v15 = vpop.f32.mrb[3].mxu0 }
 0x37f PF: > { %p1014_p5 = scmp.le.s32.totalorder %s1457_s9, 1 }
 0x380   : > { %v1242_v16 = vld [vmem:[%s1565_s23] sm:$0xff] (!%p1014_p5)   ;;  %v1390_v17 = vmov (!%p1014_p5), 0.0   ;;  %v1243_v18 = vld [vmem:[%s1565_s23 + $0x8] sm:$0xff] (!%p1014_p5)   ;;  %vm1391_vm3 = vmmov (!%p1014_p5), 0   ;;  %v1244_v19 = vld [vmem:[%s1565_s23 + $0x10] sm:$0xff] (!%p1014_p5)   ;;  %s1015_s27 = sadd.s32 (!%p1014_p5), 4294967295, %s1457_s9 }
 0x381   : > { %736 = sbr.rel (%p1014_p5) target bundleno = 1144 (0x478), region = 80  ;;  %1129 = vmatprep.subr.bf16.mxu0 (!%p1014_p5), %v1390_v17  ;;  %1145 = vmatprep.mubr.msk.bf16.mxu0 (!%p1014_p5), %vm1391_vm3, %v1390_v17  ;;  %v1245_v20 = vld [vmem:[%s1565_s23 + $0x18] sm:$0xff] (!%p1014_p5)   ;;  %v1246_v21 = vld [vmem:[%s1565_s23 + $0x20] sm:$0xff] (!%p1014_p5)   ;;  %v1247_v22 = vld [vmem:[%s1565_s23 + $0x28] sm:$0xff] (!%p1014_p5)   ;;  %s1016_s12 = sshll.u32 (!%p1014_p5), %s1015_s27, 7 }
 0x382   : > { %1130 = vmatpush3.bf16.msra.mxu0 (!%p1014_p5), %v1242_v16  ;;  %s755_s20 = sshra.s32 (!%p1014_p5), %s1016_s12, 7  ;;  %v1248_v23 = vld [vmem:[%s1565_s23 + $0x30] sm:$0xff] (!%p1014_p5)   ;;  %v1249_v24 = vld [vmem:[%s1565_s23 + $0x38] sm:$0xff] (!%p1014_p5)  }
 0x383   : > { %1131 = vmatprep.subr.bf16.mxu0 (!%p1014_p5), %v1390_v17  ;;  %s1017_s24 = sshll.u32 (!%p1014_p5), %s755_s20, 2 }
 0x384   : > { %s758_s19 = scalar_lea.vmem (!%p1014_p5), [#allocation3], %s1017_s24 }
 0x385   : > { %v759_v25 = vld [vmem:[%s758_s19] sm:$0xf] (!%p1014_p5) }
 0x386   : > { %1132 = vmatpush3.bf16.msra.mxu0 (!%p1014_p5), %v1243_v18  ;;  %v848_v26 = vld [vmem:[#allocation2] sm:$0xff] (!%p1014_p5) }
 0x387   : > { %1133 = vmatprep.subr.bf16.mxu0 (!%p1014_p5), %v1390_v17 }
 0x38a   : > { %1134 = vmatpush3.bf16.msra.mxu0 %v1244_v19 }
 0x38b   : > { %1135 = vmatprep.subr.bf16.mxu0 %v1390_v17 }
 0x38e   : > { %1136 = vmatpush3.bf16.msra.mxu0 %v1245_v20 }
 0x38f   : > { %1137 = vmatprep.subr.bf16.mxu0 %v1390_v17 }
 0x392   : > { %1138 = vmatpush3.bf16.msra.mxu0 %v1246_v21 }
 0x393   : > { %1139 = vmatprep.subr.bf16.mxu0 %v1390_v17 }
 0x396   : > { %1140 = vmatpush3.bf16.msra.mxu0 %v1247_v22 }
 0x397   : > { %1141 = vmatprep.subr.bf16.mxu0 %v1390_v17 }
 0x39a   : > { %1142 = vmatpush3.bf16.msra.mxu0 %v1248_v23 }
 0x39b   : > { %1143 = vmatprep.subr.bf16.mxu0 %v1390_v17 }
 0x39e   : > { %1144 = vmatpush3.bf16.msra.mxu0 %v1249_v24 }
 0x3a1   : > { %1146 = vmatmul.mubr.bf16.vlgmr.msra.gmra.mrb[0].mxu0 %v759_v25 }
 0x474   : > { %v842_v27 = vpop.f32.mrb[0].mxu0 }
 0x475   : > { %v849_v28 = vadd.f32 %v848_v26, %v842_v27  ;;  %v1147_v29 = vpop.f32.mrb[1].mxu0 }
 0x476   : > { %v845_v30 = vpop.f32.mrb[2].mxu0 }
 0x477   : > { %850 = vst [vmem:[#allocation2] sm:$0xff] %v849_v28  ;;  %v1148_v31 = vpop.f32.mrb[3].mxu0 }
 0x478 PF: > { %853 = sbr.rel (%p1001_p12) target bundleno = 1209 (0x4b9), region = 84  ;;  %v877_v50 = vlaneseq (!%p1001_p12)  ;;  %v855_v52 = vld [vmem:[%s1679_s6] sm:$0x1] (!%p1001_p12)  ;;  %v890_v59 = vld [vmem:[#allocation4] sm:$0xff] (!%p1001_p12) }
 0x479   : > { %v1027_v57 = vld [vmem:[%s1680_s7] ss:$0 sm:$0xff] (!%p1001_p12) }
 0x47a   : > { %v878_v51 = vshrl.u32 (!%p1001_p12), %v877_v50, 7 }
 0x47c   : > { %v879_v53 = vsub.s32 (!%p1001_p12), 0, %v878_v51 }
 0x47e   : > { %v854_v32 = vld [vmem:[#allocation2] sm:$0xff] (!%p1001_p12) }
 0x47f   : > { %v857_v33 = vrot.slane %v854_v32, 4 }
 0x481   : > { %v858_v34 = vadd.f32 %v857_v33, %v854_v32 }
 0x483   : > { %v859_v35 = vrot.slane %v858_v34, 2 }
 0x485   : > { %v860_v36 = vadd.f32 %v859_v35, %v858_v34 }
 0x487   : > { %v861_v37 = vrot.slane %v860_v36, 1 }
 0x489   : > { %v862_v38 = vadd.f32 %v861_v37, %v860_v36 }
 0x48b   : > { %v863_v39 = vmul.f32 0.125, %v862_v38 }
 0x48d   : > { %v864_v40 = vsub.f32 %v854_v32, %v863_v39 }
 0x48f   : > { %v865_v41 = vmul.f32 %v864_v40, %v864_v40 }
 0x491   : > { %v866_v42 = vrot.slane %v865_v41, 4 }
 0x493   : > { %v867_v43 = vadd.f32 %v866_v42, %v865_v41 }
 0x495   : > { %v868_v44 = vrot.slane %v867_v43, 2 }
 0x497   : > { %v869_v45 = vadd.f32 %v868_v44, %v867_v43 }
 0x499   : > { %v870_v46 = vrot.slane %v869_v45, 1 }
 0x49b   : > { %v871_v47 = vadd.f32 %v870_v46, %v869_v45 }
 0x49d   : > { %v872_v48 = vmul.f32 0.125, %v871_v47 }
 0x49f   : > { %v873_v49 = vadd.f32 1e-05, %v872_v48 }
 0x4a1   : > { %1250 = vrsqrt.f32 %v873_v49 }
 0x4ab   : > { %v1251_v54 = vpop.eup %1250 }
 0x4ac   : > { %v875_v55 = vmul.f32 %v1251_v54, %v855_v52 }
 0x4ae   : > { %v880_v56 = vrot.slane %v875_v55, %v879_v53 }
 0x4b0   : > { %v882_v58 = vmul.f32 %v880_v56, %v864_v40 }
 0x4b2   : > { %v889_v60 = vadd.f32 %v1027_v57, %v882_v58 }
 0x4b4   : > { %v891_v61 = vadd.f32 %v890_v59, %v889_v60 }
 0x4b6   : > { %v892_v62 = vmax.f32 %v891_v61, 0.0 }
 0x4b8   : > { %893 = vst [vmem:[#allocation9] sm:$0xff] %v892_v62 }
 0x4b9 PF: > { %p1170_p10 = scmp.eq.s32.totalorder %s1457_s9, 1  ;;  %s1392_s11 = smov [#allocation9]  }
 0x4ba   : > { %s901_s14 = sshll.u32 %s1392_s11, 4  ;;  %s902_s14 = int_to_ptr.vmem [resolvable:$true] %s901_s14 }
 0x4bb   : > { %s1310_s30 = scalar_lea.vmem %s902_s14, 128  ;;  %p1317_p13 = scmp.lt.s32.totalorder %s902_s14, %s902_s14 }
 0x4bc   : > { %p1311_p0 = scmp.ne.s32.totalorder %s902_s14, %s1310_s30  ;;  %p1318_p2 = scmp.lt.s32.totalorder %s1310_s30, %s1310_s30 }
 0x4be   : > { %p1312_p1 = pnand %p1311_p0, %p1170_p10  ;;  %p1319_p3 = por %p1318_p2, %p1317_p13 }
 0x4c0   : > { %p1313_p9 = pneg %p1312_p1 }
 0x4c2   : > { %p1320_p8 = pnand %p1319_p3, %p1313_p9 }
 0x4c4   : > { %1323 = shalt.err (!%p1320_p8)
}
 0x4c5   : > { %s1324_s15 = scalar_lea.hbm %s1681_s8, 128 }
 0x4c6   : > { %p1325_p6 = scmp.ne.s32.totalorder %s1681_s8, %s1324_s15  ;;  %p1330_p11 = scmp.lt.u32.totalorder %s1324_s15, %s1681_s8 }
 0x4c8   : > { %p1326_p4 = pnand %p1325_p6, %p1170_p10 }
 0x4ca   : > { %p1327_p7 = pneg %p1326_p4 }
 0x4cc   : > { %p1332_p12 = pnand %p1330_p11, %p1327_p7 }
 0x4ce   : > { %1335 = shalt.err (!%p1332_p12)
}
 0x4cf   : > { %1156 = dma.vmem_to_hbm [thread:$0]  (%p1170_p10), %s902_s14, 128, %s1681_s8, [#allocation6]  }
 0x4d0   : > { %1361 = dma.done.wait (%p1170_p10), [#allocation6], 128  }
 0x4d1   : > { %1363 = vsyncadd (%p1170_p10), [#allocation6], 4294967168 }
 0x4d2 PF: > { %p20_p5 = scmp.ge.s32.totalorder %s1460_s10, 4   ;;  %s1698_s27 = smov %s1370_s28 }
 0x4d3   : > { %s1699_s28 = smov %s1374_s29  ;;  %s1700_s29 = smov %s1470_s13 }
 0x4d4   : > { %s1701_s30 = smov %s1460_s10  ;;  %22 = sbr.rel (!%p20_p5) target bundleno = 5 (0x5), region = 122 }
 0x4db   :  { %914 = vsyncpa [#allocation5], 1 }
 0x4dc   :  { %916 = vsyncpa [#allocation5 + $0x1], 1 }
 0x4dd   :  { %917 = vsyncpa [#allocation8], 1 }
 0x4de   :  { %919 = vsyncpa [#allocation8 + $0x1], 1 }
 0x4df   :  { %920 = vsyncpa [#allocation6], 1 }
 0x4e0   :  { %922 = vsyncpa [#allocation6 + $0x1], 1 }

</bundles_post_ra>
